<compile_context>
chip_gen: v7x
topology: tpu7x:2x2x1
jax: 0.10.0
libtpu: 0.0.40
codegen_flags: <defaults>
</compile_context>

<pallas_src>
import functools

import jax
import jax.numpy as jnp
from jax.experimental import pallas as pl
from jax.experimental.pallas import tpu as pltpu

# ---------------- small "bert-base-uncased"-like config (scaled down) -------
VOCAB = 50          # word-piece vocab (synthetic)
MAX_POS = 16        # max position embeddings
TYPE_VOCAB = 2
HIDDEN = 64         # stands in for 768
NUM_HEADS = 2
HEAD_DIM = HIDDEN // NUM_HEADS
INTER = 128         # stands in for 3072
NUM_LAYERS = 2      # stands in for 12
NUM_CLASSES = 19    # from module default no_classes=19
PAD_CLASSES = 128   # lane-dense padded classifier width (sliced back to 19)
LN_EPS = 1e-12
INIT_STD = 0.02


# ------------------------------ in-kernel helpers ----------------------------
def _ln(x, g, b):
    mu = jnp.mean(x, axis=-1, keepdims=True)
    var = jnp.mean((x - mu) * (x - mu), axis=-1, keepdims=True)
    return (x - mu) * jax.lax.rsqrt(var + LN_EPS) * g + b


def _gelu(x):
    # TODO(synk): HF BERT uses erf-GELU; tanh approximation used here.
    return 0.5 * x * (1.0 + jnp.tanh(0.7978845608028654 * (x + 0.044715 * x * x * x)))


# ----------- single fused kernel: embeddings LN + encoder + pooler + head ----
def _bert_kernel(word_ref, pos_typ_ref, emb_g_ref, emb_b_ref, mask_ref,
                 qkv_w_ref, qkv_b_ref, ao_w_ref, ao_b_ref, ln1_g_ref, ln1_b_ref,
                 i_w_ref, i_b_ref, o_w_ref, o_b_ref, ln2_g_ref, ln2_b_ref,
                 pool_w_ref, pool_b_ref, cls_w_ref, cls_b_ref,
                 pooled_ref, logits_ref, x_sc, *, batch, seq):
    layer = pl.program_id(0)

    # --- layer 0: fused embedding add (word + pos + type) + LayerNorm --------
    @pl.when(layer == 0)
    def _():
        pt = jnp.concatenate([pos_typ_ref[...]] * batch, axis=0)      # (B*S, H)
        x_sc[...] = _ln(word_ref[...] + pt, emb_g_ref[...], emb_b_ref[...])

    x = x_sc[...]                                                     # (B*S, H)

    # --- fused Q/K/V projection: one (H, 3H) matmul (scale folded into Wq) ---
    qkv = jnp.dot(x, qkv_w_ref[...],
                  preferred_element_type=jnp.float32) + qkv_b_ref[...]

    # --- self-attention, all (batch, head) pairs in this invocation ----------
    mask = mask_ref[...]                                              # (B, S) additive
    ctx_rows = []
    for b in range(batch):
        rows = slice(b * seq, (b + 1) * seq)
        mask_b = mask[b:b + 1, :]                                     # (1, S)
        head_blocks = []
        for h in range(NUM_HEADS):
            q_bh = qkv[rows, h * HEAD_DIM:(h + 1) * HEAD_DIM]
            k_bh = qkv[rows, HIDDEN + h * HEAD_DIM:HIDDEN + (h + 1) * HEAD_DIM]
            v_bh = qkv[rows, 2 * HIDDEN + h * HEAD_DIM:2 * HIDDEN + (h + 1) * HEAD_DIM]
            # contract last dims directly (no explicit transpose of k)
            s = jax.lax.dot_general(q_bh, k_bh, (((1,), (1,)), ((), ())),
                                    preferred_element_type=jnp.float32)
            s = s + mask_b
            s = s - jnp.max(s, axis=-1, keepdims=True)
            p = jnp.exp(s)
            p = p * pl.reciprocal(jnp.sum(p, axis=-1, keepdims=True), approx=True)
            head_blocks.append(jnp.dot(p, v_bh, preferred_element_type=jnp.float32))
        ctx_rows.append(jnp.concatenate(head_blocks, axis=1))          # (S, H)
    ctx = jnp.concatenate(ctx_rows, axis=0)                            # (B*S, H)

    # --- attention output projection + residual + LN1 (fused epilogue) -------
    attn_out = jnp.dot(ctx, ao_w_ref[...],
                       preferred_element_type=jnp.float32) + ao_b_ref[...]
    x = _ln(attn_out + x, ln1_g_ref[...], ln1_b_ref[...])

    # --- feed-forward + residual + LN2 (fused) --------------------------------
    inter = _gelu(jnp.dot(x, i_w_ref[...],
                          preferred_element_type=jnp.float32) + i_b_ref[...])
    ffn = jnp.dot(inter, o_w_ref[...],
                  preferred_element_type=jnp.float32) + o_b_ref[...]
    x = _ln(ffn + x, ln2_g_ref[...], ln2_b_ref[...])

    x_sc[...] = x

    # --- last layer: fused pooler (CLS dense+tanh) + classifier head ----------
    @pl.when(layer == pl.num_programs(0) - 1)
    def _():
        cls_rows = jnp.concatenate(
            [x[b * seq:b * seq + 1, :] for b in range(batch)], axis=0)  # (B, H)
        pooled = jnp.tanh(
            jnp.dot(cls_rows, pool_w_ref[...],
                    preferred_element_type=jnp.float32) + pool_b_ref[...])
        pooled_ref[...] = pooled
        logits_ref[...] = jnp.dot(pooled, cls_w_ref[...],
                                  preferred_element_type=jnp.float32) + cls_b_ref[...]


def bert_fused_forward(word, pos_typ, emb_g, emb_b, neg_mask, sw,
                       pool_w, pool_b, cls_w_pad, cls_b_pad, *, batch, seq):
    BS = batch * seq
    H = HIDDEN
    kern = functools.partial(_bert_kernel, batch=batch, seq=seq)

    def rep(shape):
        # grid-invariant block: stays resident in VMEM across all layers
        return pl.BlockSpec(shape, lambda l: (0, 0))

    def w3(shape):
        # stacked per-layer weights: squeeze the layer dim, select block l
        return pl.BlockSpec((None,) + shape, lambda l: (l, 0, 0))

    pooled, logits_pad = pl.pallas_call(
        kern,
        out_shape=(jax.ShapeDtypeStruct((batch, H), jnp.float32),
                   jax.ShapeDtypeStruct((batch, PAD_CLASSES), jnp.float32)),
        grid=(NUM_LAYERS,),
        in_specs=[
            rep((BS, H)),                      # word embeddings slab
            rep((seq, H)),                     # pos + type embeddings
            rep((1, H)), rep((1, H)),          # embedding LayerNorm g, b
            rep((batch, seq)),                 # additive attention mask
            w3((H, 3 * H)), w3((1, 3 * H)),    # qkv_w, qkv_b
            w3((H, H)), w3((1, H)),            # ao_w, ao_b
            w3((1, H)), w3((1, H)),            # ln1_g, ln1_b
            w3((H, INTER)), w3((1, INTER)),    # i_w, i_b
            w3((INTER, H)), w3((1, H)),        # o_w, o_b
            w3((1, H)), w3((1, H)),            # ln2_g, ln2_b
            rep((H, H)), rep((1, H)),          # pool_w, pool_b
            rep((H, PAD_CLASSES)), rep((1, PAD_CLASSES)),   # cls_w, cls_b (padded)
        ],
        out_specs=(rep((batch, H)), rep((batch, PAD_CLASSES))),
        scratch_shapes=[pltpu.VMEM((BS, H), jnp.float32)],
        compiler_params=pltpu.CompilerParams(
            dimension_semantics=("arbitrary",)),
    )(word, pos_typ, emb_g.reshape(1, H), emb_b.reshape(1, H), neg_mask,
      sw["qkv_w"], sw["qkv_b"], sw["ao_w"], sw["ao_b"],
      sw["ln1_g"], sw["ln1_b"], sw["i_w"], sw["i_b"], sw["o_w"], sw["o_b"],
      sw["ln2_g"], sw["ln2_b"],
      pool_w, pool_b.reshape(1, H), cls_w_pad, cls_b_pad)
    return pooled, logits_pad


# ------------------------------ parameter init -------------------------------
def init_params(key):
    def nrm(k, shape):
        return (INIT_STD * jax.random.normal(k, shape)).astype(jnp.float32)

    keys = jax.random.split(key, 8 + NUM_LAYERS)
    params = {
        "word_emb": nrm(keys[0], (VOCAB, HIDDEN)),
        "pos_emb": nrm(keys[1], (MAX_POS, HIDDEN)),
        "type_emb": nrm(keys[2], (TYPE_VOCAB, HIDDEN)),
        "emb_ln_g": jnp.ones((HIDDEN,), jnp.float32),
        "emb_ln_b": jnp.zeros((HIDDEN,), jnp.float32),
        "pool_w": nrm(keys[3], (HIDDEN, HIDDEN)),
        "pool_b": jnp.zeros((HIDDEN,), jnp.float32),
        "cls_w": nrm(keys[4], (HIDDEN, NUM_CLASSES)),   # self.out = nn.Linear(768, 19)
        "cls_b": jnp.zeros((NUM_CLASSES,), jnp.float32),
        "layers": [],
    }
    for li in range(NUM_LAYERS):
        lk = jax.random.split(keys[8 + li], 6)
        params["layers"].append({
            "q_w": nrm(lk[0], (HIDDEN, HIDDEN)), "q_b": jnp.zeros((HIDDEN,), jnp.float32),
            "k_w": nrm(lk[1], (HIDDEN, HIDDEN)), "k_b": jnp.zeros((HIDDEN,), jnp.float32),
            "v_w": nrm(lk[2], (HIDDEN, HIDDEN)), "v_b": jnp.zeros((HIDDEN,), jnp.float32),
            "ao_w": nrm(lk[3], (HIDDEN, HIDDEN)), "ao_b": jnp.zeros((HIDDEN,), jnp.float32),
            "ln1_g": jnp.ones((HIDDEN,), jnp.float32), "ln1_b": jnp.zeros((HIDDEN,), jnp.float32),
            "i_w": nrm(lk[4], (HIDDEN, INTER)), "i_b": jnp.zeros((INTER,), jnp.float32),
            "o_w": nrm(lk[5], (INTER, HIDDEN)), "o_b": jnp.zeros((HIDDEN,), jnp.float32),
            "ln2_g": jnp.ones((HIDDEN,), jnp.float32), "ln2_b": jnp.zeros((HIDDEN,), jnp.float32),
        })
    return params


def _stack_layers(layers):
    # Fold the 1/sqrt(head_dim) attention scale into the Q weights/bias so the
    # kernel never multiplies scores by the scale.
    scale = 1.0 / float(HEAD_DIM) ** 0.5

    def s(f):
        return jnp.stack([f(l) for l in layers])

    return {
        "qkv_w": s(lambda l: jnp.concatenate(
            [l["q_w"] * scale, l["k_w"], l["v_w"]], axis=1)),
        "qkv_b": s(lambda l: jnp.concatenate(
            [l["q_b"] * scale, l["k_b"], l["v_b"]])[None, :]),
        "ao_w": s(lambda l: l["ao_w"]),
        "ao_b": s(lambda l: l["ao_b"][None, :]),
        "ln1_g": s(lambda l: l["ln1_g"][None, :]),
        "ln1_b": s(lambda l: l["ln1_b"][None, :]),
        "i_w": s(lambda l: l["i_w"]),
        "i_b": s(lambda l: l["i_b"][None, :]),
        "o_w": s(lambda l: l["o_w"]),
        "o_b": s(lambda l: l["o_b"][None, :]),
        "ln2_g": s(lambda l: l["ln2_g"][None, :]),
        "ln2_b": s(lambda l: l["ln2_b"][None, :]),
    }


# ------------------------------ forward pass ---------------------------------
def bert_text_classification_forward(params, input_ids, attn_mask):
    """Mirrors BERT_text_classification.forward: returns {'logit', 'LM_feat'}."""
    B, S = input_ids.shape

    # embedding gather stays in JAX glue (data-dependent row gather)
    word = params["word_emb"][input_ids].reshape(B * S, HIDDEN)
    pos_typ = params["pos_emb"][:S] + params["type_emb"][0][None, :]     # (S, H)

    # HF-style extended attention mask: 0 where attended, -1e9 where padded
    neg_mask = (1.0 - attn_mask.astype(jnp.float32)) * -1e9              # (B, S)

    stacked = _stack_layers(params["layers"])

    # lane-densify classifier output: pad 19 -> 128 columns (zeros), slice later
    cls_w_pad = jnp.pad(params["cls_w"], ((0, 0), (0, PAD_CLASSES - NUM_CLASSES)))
    cls_b_pad = jnp.pad(params["cls_b"],
                        (0, PAD_CLASSES - NUM_CLASSES)).reshape(1, PAD_CLASSES)

    pooled, logits_pad = bert_fused_forward(
        word, pos_typ, params["emb_ln_g"], params["emb_ln_b"], neg_mask,
        stacked, params["pool_w"], params["pool_b"], cls_w_pad, cls_b_pad,
        batch=B, seq=S)

    return {"logit": logits_pad[:, :NUM_CLASSES], "LM_feat": pooled}


# ---------------------------------- main --------------------------------------
if __name__ == "__main__":
    key = jax.random.PRNGKey(0)
    pkey, ikey = jax.random.split(key)

    params = init_params(pkey)

    B, S = 2, 8
    input_ids = jax.random.randint(ikey, (B, S), 0, VOCAB, dtype=jnp.int32)
    # second sequence has 3 padding positions masked out
    attn_mask = jnp.array([[1, 1, 1, 1, 1, 1, 1, 1],
                           [1, 1, 1, 1, 1, 0, 0, 0]], dtype=jnp.int32)

    fwd = jax.jit(bert_text_classification_forward)
    out = fwd(params, input_ids, attn_mask)
    out = jax.block_until_ready(out)

    assert out["logit"].shape == (B, NUM_CLASSES)
    assert out["LM_feat"].shape == (B, HIDDEN)
    assert bool(jnp.all(jnp.isfinite(out["logit"]))) and bool(
        jnp.all(jnp.isfinite(out["LM_feat"])))
    print("KERNEL_OK")
</pallas_src>

<mosaic_0001>
module attributes {stable_mosaic.version = 11 : i64} {
  func.func @_bert_kernel(%arg0: i32, %arg1: memref<16x64xf32, #tpu.memory_space<vmem>>, %arg2: memref<8x64xf32, #tpu.memory_space<vmem>>, %arg3: memref<1x64xf32, #tpu.memory_space<vmem>>, %arg4: memref<1x64xf32, #tpu.memory_space<vmem>>, %arg5: memref<2x8xf32, #tpu.memory_space<vmem>>, %arg6: memref<1x64x192xf32, #tpu.memory_space<vmem>>, %arg7: memref<1x1x192xf32, #tpu.memory_space<vmem>>, %arg8: memref<1x64x64xf32, #tpu.memory_space<vmem>>, %arg9: memref<1x1x64xf32, #tpu.memory_space<vmem>>, %arg10: memref<1x1x64xf32, #tpu.memory_space<vmem>>, %arg11: memref<1x1x64xf32, #tpu.memory_space<vmem>>, %arg12: memref<1x64x128xf32, #tpu.memory_space<vmem>>, %arg13: memref<1x1x128xf32, #tpu.memory_space<vmem>>, %arg14: memref<1x128x64xf32, #tpu.memory_space<vmem>>, %arg15: memref<1x1x64xf32, #tpu.memory_space<vmem>>, %arg16: memref<1x1x64xf32, #tpu.memory_space<vmem>>, %arg17: memref<1x1x64xf32, #tpu.memory_space<vmem>>, %arg18: memref<64x64xf32, #tpu.memory_space<vmem>>, %arg19: memref<1x64xf32, #tpu.memory_space<vmem>>, %arg20: memref<64x128xf32, #tpu.memory_space<vmem>>, %arg21: memref<1x128xf32, #tpu.memory_space<vmem>>, %arg22: memref<2x64xf32, #tpu.memory_space<vmem>>, %arg23: memref<2x128xf32, #tpu.memory_space<vmem>>, %arg24: memref<16x64xf32, #tpu.memory_space<vmem>>) attributes {dimension_semantics = [#tpu.dimension_semantics<arbitrary>], iteration_bounds = array<i64: 2>, scalar_prefetch = 0 : i64, scratch_operands = 1 : i64, tpu.core_type = #tpu.core_type<tc>, window_params = [{pipeline_mode = #tpu.pipeline_mode<synchronous>, transform_indices = @transform_0, window_bounds = array<i64: 16, 64>}, {pipeline_mode = #tpu.pipeline_mode<synchronous>, transform_indices = @transform_1, window_bounds = array<i64: 8, 64>}, {pipeline_mode = #tpu.pipeline_mode<synchronous>, transform_indices = @transform_2, window_bounds = array<i64: 1, 64>}, {pipeline_mode = #tpu.pipeline_mode<synchronous>, transform_indices = @transform_3, window_bounds = array<i64: 1, 64>}, {pipeline_mode = #tpu.pipeline_mode<synchronous>, transform_indices = @transform_4, window_bounds = array<i64: 2, 8>}, {transform_indices = @transform_5, window_bounds = array<i64: 1, 64, 192>}, {transform_indices = @transform_6, window_bounds = array<i64: 1, 1, 192>}, {transform_indices = @transform_7, window_bounds = array<i64: 1, 64, 64>}, {transform_indices = @transform_8, window_bounds = array<i64: 1, 1, 64>}, {transform_indices = @transform_9, window_bounds = array<i64: 1, 1, 64>}, {transform_indices = @transform_10, window_bounds = array<i64: 1, 1, 64>}, {transform_indices = @transform_11, window_bounds = array<i64: 1, 64, 128>}, {transform_indices = @transform_12, window_bounds = array<i64: 1, 1, 128>}, {transform_indices = @transform_13, window_bounds = array<i64: 1, 128, 64>}, {transform_indices = @transform_14, window_bounds = array<i64: 1, 1, 64>}, {transform_indices = @transform_15, window_bounds = array<i64: 1, 1, 64>}, {transform_indices = @transform_16, window_bounds = array<i64: 1, 1, 64>}, {pipeline_mode = #tpu.pipeline_mode<synchronous>, transform_indices = @transform_17, window_bounds = array<i64: 64, 64>}, {pipeline_mode = #tpu.pipeline_mode<synchronous>, transform_indices = @transform_18, window_bounds = array<i64: 1, 64>}, {pipeline_mode = #tpu.pipeline_mode<synchronous>, transform_indices = @transform_19, window_bounds = array<i64: 64, 128>}, {pipeline_mode = #tpu.pipeline_mode<synchronous>, transform_indices = @transform_20, window_bounds = array<i64: 1, 128>}, {pipeline_mode = #tpu.pipeline_mode<synchronous>, transform_indices = @transform_21, window_bounds = array<i64: 2, 64>}, {pipeline_mode = #tpu.pipeline_mode<synchronous>, transform_indices = @transform_22, window_bounds = array<i64: 2, 128>}]} {
    %c0_i32 = arith.constant 0 : i32
    %0 = arith.cmpi eq, %arg0, %c0_i32 : i32
    %1 = arith.extui %0 : i1 to i32
    %c0_i32_0 = arith.constant 0 : i32
    %2 = arith.cmpi ne, %1, %c0_i32_0 : i32
    scf.if %2 {
      %c0_76 = arith.constant 0 : index
      %c0_77 = arith.constant 0 : index
      %181 = vector.load %arg2[%c0_76, %c0_77] : memref<8x64xf32, #tpu.memory_space<vmem>>, vector<8x64xf32>
      %182 = tpu.concatenate %181, %181 in 0 : vector<8x64xf32>, vector<8x64xf32> -> vector<16x64xf32>
      %c0_78 = arith.constant 0 : index
      %c0_79 = arith.constant 0 : index
      %183 = vector.load %arg1[%c0_78, %c0_79] : memref<16x64xf32, #tpu.memory_space<vmem>>, vector<16x64xf32>
      %184 = arith.addf %183, %182 : vector<16x64xf32>
      %c0_80 = arith.constant 0 : index
      %c0_81 = arith.constant 0 : index
      %185 = vector.load %arg3[%c0_80, %c0_81] : memref<1x64xf32, #tpu.memory_space<vmem>>, vector<1x64xf32>
      %c0_82 = arith.constant 0 : index
      %c0_83 = arith.constant 0 : index
      %186 = vector.load %arg4[%c0_82, %c0_83] : memref<1x64xf32, #tpu.memory_space<vmem>>, vector<1x64xf32>
      %cst_84 = arith.constant dense<0.000000e+00> : vector<16xf32>
      %187 = vector.multi_reduction <add>, %184, %cst_84 [1] : vector<16x64xf32> to vector<16xf32>
      %188 = vector.shape_cast %187 : vector<16xf32> to vector<16x1xf32>
      %cst_85 = arith.constant 6.400000e+01 : f32
      %189 = vector.broadcast %cst_85 : f32 to vector<16x1xf32>
      %190 = arith.divf %188, %189 : vector<16x1xf32>
      %191 = vector.broadcast %190 : vector<16x1xf32> to vector<16x64xf32>
      %192 = arith.subf %184, %191 : vector<16x64xf32>
      %193 = vector.broadcast %190 : vector<16x1xf32> to vector<16x64xf32>
      %194 = arith.subf %184, %193 : vector<16x64xf32>
      %195 = arith.mulf %192, %194 : vector<16x64xf32>
      %cst_86 = arith.constant dense<0.000000e+00> : vector<16xf32>
      %196 = vector.multi_reduction <add>, %195, %cst_86 [1] : vector<16x64xf32> to vector<16xf32>
      %197 = vector.shape_cast %196 : vector<16xf32> to vector<16x1xf32>
      %cst_87 = arith.constant 6.400000e+01 : f32
      %198 = vector.broadcast %cst_87 : f32 to vector<16x1xf32>
      %199 = arith.divf %197, %198 : vector<16x1xf32>
      %200 = vector.broadcast %190 : vector<16x1xf32> to vector<16x64xf32>
      %201 = arith.subf %184, %200 : vector<16x64xf32>
      %cst_88 = arith.constant 9.99999996E-13 : f32
      %202 = vector.broadcast %cst_88 : f32 to vector<16x1xf32>
      %203 = arith.addf %199, %202 : vector<16x1xf32>
      %204 = math.rsqrt %203 : vector<16x1xf32>
      %205 = vector.broadcast %204 : vector<16x1xf32> to vector<16x64xf32>
      %206 = arith.mulf %201, %205 : vector<16x64xf32>
      %207 = vector.broadcast %185 : vector<1x64xf32> to vector<16x64xf32>
      %208 = arith.mulf %206, %207 : vector<16x64xf32>
      %209 = vector.broadcast %186 : vector<1x64xf32> to vector<16x64xf32>
      %210 = arith.addf %208, %209 : vector<16x64xf32>
      %c0_89 = arith.constant 0 : index
      %c0_90 = arith.constant 0 : index
      %211 = vector.load %arg24[%c0_89, %c0_90] : memref<16x64xf32, #tpu.memory_space<vmem>>, vector<16x64xf32>
      tpu.vector_store %arg24[%c0_89, %c0_90], %210 {strides = array<i32>} : memref<16x64xf32, #tpu.memory_space<vmem>>, vector<16x64xf32>,
    } else {
    }
    %c0 = arith.constant 0 : index
    %c0_1 = arith.constant 0 : index
    %3 = vector.load %arg24[%c0, %c0_1] : memref<16x64xf32, #tpu.memory_space<vmem>>, vector<16x64xf32>
    %c0_2 = arith.constant 0 : index
    %c0_3 = arith.constant 0 : index
    %c0_4 = arith.constant 0 : index
    %4 = vector.load %arg6[%c0_2, %c0_3, %c0_4] : memref<1x64x192xf32, #tpu.memory_space<vmem>>, vector<1x64x192xf32>
    %5 = vector.shape_cast %4 : vector<1x64x192xf32> to vector<64x192xf32>
    %cst = arith.constant dense<0.000000e+00> : vector<16x192xf32>
    %6 = tpu.matmul %3, %5, %cst {dimension_numbers = #tpu.dot_dimension_numbers<[1], [0], [0], [1], [0, 0, 1, 1], [], []>} : vector<16x64xf32>, vector<64x192xf32>, vector<16x192xf32> -> vector<16x192xf32>
    %c0_5 = arith.constant 0 : index
    %c0_6 = arith.constant 0 : index
    %c0_7 = arith.constant 0 : index
    %7 = vector.load %arg7[%c0_5, %c0_6, %c0_7] : memref<1x1x192xf32, #tpu.memory_space<vmem>>, vector<1x1x192xf32>
    %8 = vector.shape_cast %7 : vector<1x1x192xf32> to vector<1x192xf32>
    %9 = vector.broadcast %8 : vector<1x192xf32> to vector<16x192xf32>
    %10 = arith.addf %6, %9 : vector<16x192xf32>
    %c0_8 = arith.constant 0 : index
    %c0_9 = arith.constant 0 : index
    %11 = vector.load %arg5[%c0_8, %c0_9] : memref<2x8xf32, #tpu.memory_space<vmem>>, vector<2x8xf32>
    %12 = vector.extract_strided_slice %11 {offsets = [0, 0], sizes = [1, 8], strides = [1, 1]} : vector<2x8xf32> to vector<1x8xf32>
    %13 = vector.extract_strided_slice %10 {offsets = [0, 0], sizes = [8, 32], strides = [1, 1]} : vector<16x192xf32> to vector<8x32xf32>
    %14 = vector.extract_strided_slice %10 {offsets = [0, 64], sizes = [8, 32], strides = [1, 1]} : vector<16x192xf32> to vector<8x32xf32>
    %15 = vector.extract_strided_slice %10 {offsets = [0, 128], sizes = [8, 32], strides = [1, 1]} : vector<16x192xf32> to vector<8x32xf32>
    %cst_10 = arith.constant dense<0.000000e+00> : vector<8x8xf32>
    %16 = tpu.matmul %13, %14, %cst_10 {dimension_numbers = #tpu.dot_dimension_numbers<[1], [1], [0], [0], [0, 0, 1, 0], [], []>} : vector<8x32xf32>, vector<8x32xf32>, vector<8x8xf32> -> vector<8x8xf32>
    %17 = vector.broadcast %12 : vector<1x8xf32> to vector<8x8xf32>
    %18 = arith.addf %16, %17 : vector<8x8xf32>
    %cst_11 = arith.constant dense<0xFF800000> : vector<8xf32>
    %19 = vector.multi_reduction <maximumf>, %18, %cst_11 [1] : vector<8x8xf32> to vector<8xf32>
    %20 = vector.shape_cast %19 : vector<8xf32> to vector<8x1xf32>
    %21 = vector.broadcast %20 : vector<8x1xf32> to vector<8x8xf32>
    %22 = arith.subf %18, %21 : vector<8x8xf32>
    %23 = math.exp %22 : vector<8x8xf32>
    %cst_12 = arith.constant dense<0.000000e+00> : vector<8xf32>
    %24 = vector.multi_reduction <add>, %23, %cst_12 [1] : vector<8x8xf32> to vector<8xf32>
    %25 = vector.shape_cast %24 : vector<8xf32> to vector<8x1xf32>
    %26 = tpu.reciprocal %25 {approx = true} : vector<8x1xf32> -> vector<8x1xf32>
    %27 = vector.broadcast %26 : vector<8x1xf32> to vector<8x8xf32>
    %28 = arith.mulf %23, %27 : vector<8x8xf32>
    %cst_13 = arith.constant dense<0.000000e+00> : vector<8x32xf32>
    %29 = tpu.matmul %28, %15, %cst_13 {dimension_numbers = #tpu.dot_dimension_numbers<[1], [0], [0], [1], [0, 0, 1, 1], [], []>} : vector<8x8xf32>, vector<8x32xf32>, vector<8x32xf32> -> vector<8x32xf32>
    %30 = vector.extract_strided_slice %10 {offsets = [0, 32], sizes = [8, 32], strides = [1, 1]} : vector<16x192xf32> to vector<8x32xf32>
    %31 = vector.extract_strided_slice %10 {offsets = [0, 96], sizes = [8, 32], strides = [1, 1]} : vector<16x192xf32> to vector<8x32xf32>
    %32 = vector.extract_strided_slice %10 {offsets = [0, 160], sizes = [8, 32], strides = [1, 1]} : vector<16x192xf32> to vector<8x32xf32>
    %cst_14 = arith.constant dense<0.000000e+00> : vector<8x8xf32>
    %33 = tpu.matmul %30, %31, %cst_14 {dimension_numbers = #tpu.dot_dimension_numbers<[1], [1], [0], [0], [0, 0, 1, 0], [], []>} : vector<8x32xf32>, vector<8x32xf32>, vector<8x8xf32> -> vector<8x8xf32>
    %34 = vector.broadcast %12 : vector<1x8xf32> to vector<8x8xf32>
    %35 = arith.addf %33, %34 : vector<8x8xf32>
    %cst_15 = arith.constant dense<0xFF800000> : vector<8xf32>
    %36 = vector.multi_reduction <maximumf>, %35, %cst_15 [1] : vector<8x8xf32> to vector<8xf32>
    %37 = vector.shape_cast %36 : vector<8xf32> to vector<8x1xf32>
    %38 = vector.broadcast %37 : vector<8x1xf32> to vector<8x8xf32>
    %39 = arith.subf %35, %38 : vector<8x8xf32>
    %40 = math.exp %39 : vector<8x8xf32>
    %cst_16 = arith.constant dense<0.000000e+00> : vector<8xf32>
    %41 = vector.multi_reduction <add>, %40, %cst_16 [1] : vector<8x8xf32> to vector<8xf32>
    %42 = vector.shape_cast %41 : vector<8xf32> to vector<8x1xf32>
    %43 = tpu.reciprocal %42 {approx = true} : vector<8x1xf32> -> vector<8x1xf32>
    %44 = vector.broadcast %43 : vector<8x1xf32> to vector<8x8xf32>
    %45 = arith.mulf %40, %44 : vector<8x8xf32>
    %cst_17 = arith.constant dense<0.000000e+00> : vector<8x32xf32>
    %46 = tpu.matmul %45, %32, %cst_17 {dimension_numbers = #tpu.dot_dimension_numbers<[1], [0], [0], [1], [0, 0, 1, 1], [], []>} : vector<8x8xf32>, vector<8x32xf32>, vector<8x32xf32> -> vector<8x32xf32>
    %47 = tpu.concatenate %29, %46 in 1 : vector<8x32xf32>, vector<8x32xf32> -> vector<8x64xf32>
    %48 = vector.extract_strided_slice %11 {offsets = [1, 0], sizes = [1, 8], strides = [1, 1]} : vector<2x8xf32> to vector<1x8xf32>
    %49 = vector.extract_strided_slice %10 {offsets = [8, 0], sizes = [8, 32], strides = [1, 1]} : vector<16x192xf32> to vector<8x32xf32>
    %50 = vector.extract_strided_slice %10 {offsets = [8, 64], sizes = [8, 32], strides = [1, 1]} : vector<16x192xf32> to vector<8x32xf32>
    %51 = vector.extract_strided_slice %10 {offsets = [8, 128], sizes = [8, 32], strides = [1, 1]} : vector<16x192xf32> to vector<8x32xf32>
    %cst_18 = arith.constant dense<0.000000e+00> : vector<8x8xf32>
    %52 = tpu.matmul %49, %50, %cst_18 {dimension_numbers = #tpu.dot_dimension_numbers<[1], [1], [0], [0], [0, 0, 1, 0], [], []>} : vector<8x32xf32>, vector<8x32xf32>, vector<8x8xf32> -> vector<8x8xf32>
    %53 = vector.broadcast %48 : vector<1x8xf32> to vector<8x8xf32>
    %54 = arith.addf %52, %53 : vector<8x8xf32>
    %cst_19 = arith.constant dense<0xFF800000> : vector<8xf32>
    %55 = vector.multi_reduction <maximumf>, %54, %cst_19 [1] : vector<8x8xf32> to vector<8xf32>
    %56 = vector.shape_cast %55 : vector<8xf32> to vector<8x1xf32>
    %57 = vector.broadcast %56 : vector<8x1xf32> to vector<8x8xf32>
    %58 = arith.subf %54, %57 : vector<8x8xf32>
    %59 = math.exp %58 : vector<8x8xf32>
    %cst_20 = arith.constant dense<0.000000e+00> : vector<8xf32>
    %60 = vector.multi_reduction <add>, %59, %cst_20 [1] : vector<8x8xf32> to vector<8xf32>
    %61 = vector.shape_cast %60 : vector<8xf32> to vector<8x1xf32>
    %62 = tpu.reciprocal %61 {approx = true} : vector<8x1xf32> -> vector<8x1xf32>
    %63 = vector.broadcast %62 : vector<8x1xf32> to vector<8x8xf32>
    %64 = arith.mulf %59, %63 : vector<8x8xf32>
    %cst_21 = arith.constant dense<0.000000e+00> : vector<8x32xf32>
    %65 = tpu.matmul %64, %51, %cst_21 {dimension_numbers = #tpu.dot_dimension_numbers<[1], [0], [0], [1], [0, 0, 1, 1], [], []>} : vector<8x8xf32>, vector<8x32xf32>, vector<8x32xf32> -> vector<8x32xf32>
    %66 = vector.extract_strided_slice %10 {offsets = [8, 32], sizes = [8, 32], strides = [1, 1]} : vector<16x192xf32> to vector<8x32xf32>
    %67 = vector.extract_strided_slice %10 {offsets = [8, 96], sizes = [8, 32], strides = [1, 1]} : vector<16x192xf32> to vector<8x32xf32>
    %68 = vector.extract_strided_slice %10 {offsets = [8, 160], sizes = [8, 32], strides = [1, 1]} : vector<16x192xf32> to vector<8x32xf32>
    %cst_22 = arith.constant dense<0.000000e+00> : vector<8x8xf32>
    %69 = tpu.matmul %66, %67, %cst_22 {dimension_numbers = #tpu.dot_dimension_numbers<[1], [1], [0], [0], [0, 0, 1, 0], [], []>} : vector<8x32xf32>, vector<8x32xf32>, vector<8x8xf32> -> vector<8x8xf32>
    %70 = vector.broadcast %48 : vector<1x8xf32> to vector<8x8xf32>
    %71 = arith.addf %69, %70 : vector<8x8xf32>
    %cst_23 = arith.constant dense<0xFF800000> : vector<8xf32>
    %72 = vector.multi_reduction <maximumf>, %71, %cst_23 [1] : vector<8x8xf32> to vector<8xf32>
    %73 = vector.shape_cast %72 : vector<8xf32> to vector<8x1xf32>
    %74 = vector.broadcast %73 : vector<8x1xf32> to vector<8x8xf32>
    %75 = arith.subf %71, %74 : vector<8x8xf32>
    %76 = math.exp %75 : vector<8x8xf32>
    %cst_24 = arith.constant dense<0.000000e+00> : vector<8xf32>
    %77 = vector.multi_reduction <add>, %76, %cst_24 [1] : vector<8x8xf32> to vector<8xf32>
    %78 = vector.shape_cast %77 : vector<8xf32> to vector<8x1xf32>
    %79 = tpu.reciprocal %78 {approx = true} : vector<8x1xf32> -> vector<8x1xf32>
    %80 = vector.broadcast %79 : vector<8x1xf32> to vector<8x8xf32>
    %81 = arith.mulf %76, %80 : vector<8x8xf32>
    %cst_25 = arith.constant dense<0.000000e+00> : vector<8x32xf32>
    %82 = tpu.matmul %81, %68, %cst_25 {dimension_numbers = #tpu.dot_dimension_numbers<[1], [0], [0], [1], [0, 0, 1, 1], [], []>} : vector<8x8xf32>, vector<8x32xf32>, vector<8x32xf32> -> vector<8x32xf32>
    %83 = tpu.concatenate %65, %82 in 1 : vector<8x32xf32>, vector<8x32xf32> -> vector<8x64xf32>
    %84 = tpu.concatenate %47, %83 in 0 : vector<8x64xf32>, vector<8x64xf32> -> vector<16x64xf32>
    %c0_26 = arith.constant 0 : index
    %c0_27 = arith.constant 0 : index
    %c0_28 = arith.constant 0 : index
    %85 = vector.load %arg8[%c0_26, %c0_27, %c0_28] : memref<1x64x64xf32, #tpu.memory_space<vmem>>, vector<1x64x64xf32>
    %86 = vector.shape_cast %85 : vector<1x64x64xf32> to vector<64x64xf32>
    %cst_29 = arith.constant dense<0.000000e+00> : vector<16x64xf32>
    %87 = tpu.matmul %84, %86, %cst_29 {dimension_numbers = #tpu.dot_dimension_numbers<[1], [0], [0], [1], [0, 0, 1, 1], [], []>} : vector<16x64xf32>, vector<64x64xf32>, vector<16x64xf32> -> vector<16x64xf32>
    %c0_30 = arith.constant 0 : index
    %c0_31 = arith.constant 0 : index
    %c0_32 = arith.constant 0 : index
    %88 = vector.load %arg9[%c0_30, %c0_31, %c0_32] : memref<1x1x64xf32, #tpu.memory_space<vmem>>, vector<1x1x64xf32>
    %89 = vector.shape_cast %88 : vector<1x1x64xf32> to vector<1x64xf32>
    %90 = vector.broadcast %89 : vector<1x64xf32> to vector<16x64xf32>
    %91 = arith.addf %87, %90 : vector<16x64xf32>
    %92 = arith.addf %91, %3 : vector<16x64xf32>
    %c0_33 = arith.constant 0 : index
    %c0_34 = arith.constant 0 : index
    %c0_35 = arith.constant 0 : index
    %93 = vector.load %arg10[%c0_33, %c0_34, %c0_35] : memref<1x1x64xf32, #tpu.memory_space<vmem>>, vector<1x1x64xf32>
    %94 = vector.shape_cast %93 : vector<1x1x64xf32> to vector<1x64xf32>
    %c0_36 = arith.constant 0 : index
    %c0_37 = arith.constant 0 : index
    %c0_38 = arith.constant 0 : index
    %95 = vector.load %arg11[%c0_36, %c0_37, %c0_38] : memref<1x1x64xf32, #tpu.memory_space<vmem>>, vector<1x1x64xf32>
    %96 = vector.shape_cast %95 : vector<1x1x64xf32> to vector<1x64xf32>
    %cst_39 = arith.constant dense<0.000000e+00> : vector<16xf32>
    %97 = vector.multi_reduction <add>, %92, %cst_39 [1] : vector<16x64xf32> to vector<16xf32>
    %98 = vector.shape_cast %97 : vector<16xf32> to vector<16x1xf32>
    %cst_40 = arith.constant 6.400000e+01 : f32
    %99 = vector.broadcast %cst_40 : f32 to vector<16x1xf32>
    %100 = arith.divf %98, %99 : vector<16x1xf32>
    %101 = vector.broadcast %100 : vector<16x1xf32> to vector<16x64xf32>
    %102 = arith.subf %92, %101 : vector<16x64xf32>
    %103 = vector.broadcast %100 : vector<16x1xf32> to vector<16x64xf32>
    %104 = arith.subf %92, %103 : vector<16x64xf32>
    %105 = arith.mulf %102, %104 : vector<16x64xf32>
    %cst_41 = arith.constant dense<0.000000e+00> : vector<16xf32>
    %106 = vector.multi_reduction <add>, %105, %cst_41 [1] : vector<16x64xf32> to vector<16xf32>
    %107 = vector.shape_cast %106 : vector<16xf32> to vector<16x1xf32>
    %cst_42 = arith.constant 6.400000e+01 : f32
    %108 = vector.broadcast %cst_42 : f32 to vector<16x1xf32>
    %109 = arith.divf %107, %108 : vector<16x1xf32>
    %110 = vector.broadcast %100 : vector<16x1xf32> to vector<16x64xf32>
    %111 = arith.subf %92, %110 : vector<16x64xf32>
    %cst_43 = arith.constant 9.99999996E-13 : f32
    %112 = vector.broadcast %cst_43 : f32 to vector<16x1xf32>
    %113 = arith.addf %109, %112 : vector<16x1xf32>
    %114 = math.rsqrt %113 : vector<16x1xf32>
    %115 = vector.broadcast %114 : vector<16x1xf32> to vector<16x64xf32>
    %116 = arith.mulf %111, %115 : vector<16x64xf32>
    %117 = vector.broadcast %94 : vector<1x64xf32> to vector<16x64xf32>
    %118 = arith.mulf %116, %117 : vector<16x64xf32>
    %119 = vector.broadcast %96 : vector<1x64xf32> to vector<16x64xf32>
    %120 = arith.addf %118, %119 : vector<16x64xf32>
    %c0_44 = arith.constant 0 : index
    %c0_45 = arith.constant 0 : index
    %c0_46 = arith.constant 0 : index
    %121 = vector.load %arg12[%c0_44, %c0_45, %c0_46] : memref<1x64x128xf32, #tpu.memory_space<vmem>>, vector<1x64x128xf32>
    %122 = vector.shape_cast %121 : vector<1x64x128xf32> to vector<64x128xf32>
    %cst_47 = arith.constant dense<0.000000e+00> : vector<16x128xf32>
    %123 = tpu.matmul %120, %122, %cst_47 {dimension_numbers = #tpu.dot_dimension_numbers<[1], [0], [0], [1], [0, 0, 1, 1], [], []>} : vector<16x64xf32>, vector<64x128xf32>, vector<16x128xf32> -> vector<16x128xf32>
    %c0_48 = arith.constant 0 : index
    %c0_49 = arith.constant 0 : index
    %c0_50 = arith.constant 0 : index
    %124 = vector.load %arg13[%c0_48, %c0_49, %c0_50] : memref<1x1x128xf32, #tpu.memory_space<vmem>>, vector<1x1x128xf32>
    %125 = vector.shape_cast %124 : vector<1x1x128xf32> to vector<1x128xf32>
    %126 = vector.broadcast %125 : vector<1x128xf32> to vector<16x128xf32>
    %127 = arith.addf %123, %126 : vector<16x128xf32>
    %cst_51 = arith.constant 5.000000e-01 : f32
    %128 = vector.broadcast %cst_51 : f32 to vector<16x128xf32>
    %129 = arith.mulf %128, %127 : vector<16x128xf32>
    %cst_52 = arith.constant 4.471500e-02 : f32
    %130 = vector.broadcast %cst_52 : f32 to vector<16x128xf32>
    %131 = arith.mulf %130, %127 : vector<16x128xf32>
    %132 = arith.mulf %131, %127 : vector<16x128xf32>
    %133 = arith.mulf %132, %127 : vector<16x128xf32>
    %134 = arith.addf %127, %133 : vector<16x128xf32>
    %cst_53 = arith.constant 0.797884583 : f32
    %135 = vector.broadcast %cst_53 : f32 to vector<16x128xf32>
    %136 = arith.mulf %135, %134 : vector<16x128xf32>
    %137 = math.tanh %136 : vector<16x128xf32>
    %cst_54 = arith.constant 1.000000e+00 : f32
    %138 = vector.broadcast %cst_54 : f32 to vector<16x128xf32>
    %139 = arith.addf %138, %137 : vector<16x128xf32>
    %140 = arith.mulf %129, %139 : vector<16x128xf32>
    %c0_55 = arith.constant 0 : index
    %c0_56 = arith.constant 0 : index
    %c0_57 = arith.constant 0 : index
    %141 = vector.load %arg14[%c0_55, %c0_56, %c0_57] : memref<1x128x64xf32, #tpu.memory_space<vmem>>, vector<1x128x64xf32>
    %142 = vector.shape_cast %141 : vector<1x128x64xf32> to vector<128x64xf32>
    %cst_58 = arith.constant dense<0.000000e+00> : vector<16x64xf32>
    %143 = tpu.matmul %140, %142, %cst_58 {dimension_numbers = #tpu.dot_dimension_numbers<[1], [0], [0], [1], [0, 0, 1, 1], [], []>} : vector<16x128xf32>, vector<128x64xf32>, vector<16x64xf32> -> vector<16x64xf32>
    %c0_59 = arith.constant 0 : index
    %c0_60 = arith.constant 0 : index
    %c0_61 = arith.constant 0 : index
    %144 = vector.load %arg15[%c0_59, %c0_60, %c0_61] : memref<1x1x64xf32, #tpu.memory_space<vmem>>, vector<1x1x64xf32>
    %145 = vector.shape_cast %144 : vector<1x1x64xf32> to vector<1x64xf32>
    %146 = vector.broadcast %145 : vector<1x64xf32> to vector<16x64xf32>
    %147 = arith.addf %143, %146 : vector<16x64xf32>
    %148 = arith.addf %147, %120 : vector<16x64xf32>
    %c0_62 = arith.constant 0 : index
    %c0_63 = arith.constant 0 : index
    %c0_64 = arith.constant 0 : index
    %149 = vector.load %arg16[%c0_62, %c0_63, %c0_64] : memref<1x1x64xf32, #tpu.memory_space<vmem>>, vector<1x1x64xf32>
    %150 = vector.shape_cast %149 : vector<1x1x64xf32> to vector<1x64xf32>
    %c0_65 = arith.constant 0 : index
    %c0_66 = arith.constant 0 : index
    %c0_67 = arith.constant 0 : index
    %151 = vector.load %arg17[%c0_65, %c0_66, %c0_67] : memref<1x1x64xf32, #tpu.memory_space<vmem>>, vector<1x1x64xf32>
    %152 = vector.shape_cast %151 : vector<1x1x64xf32> to vector<1x64xf32>
    %cst_68 = arith.constant dense<0.000000e+00> : vector<16xf32>
    %153 = vector.multi_reduction <add>, %148, %cst_68 [1] : vector<16x64xf32> to vector<16xf32>
    %154 = vector.shape_cast %153 : vector<16xf32> to vector<16x1xf32>
    %cst_69 = arith.constant 6.400000e+01 : f32
    %155 = vector.broadcast %cst_69 : f32 to vector<16x1xf32>
    %156 = arith.divf %154, %155 : vector<16x1xf32>
    %157 = vector.broadcast %156 : vector<16x1xf32> to vector<16x64xf32>
    %158 = arith.subf %148, %157 : vector<16x64xf32>
    %159 = vector.broadcast %156 : vector<16x1xf32> to vector<16x64xf32>
    %160 = arith.subf %148, %159 : vector<16x64xf32>
    %161 = arith.mulf %158, %160 : vector<16x64xf32>
    %cst_70 = arith.constant dense<0.000000e+00> : vector<16xf32>
    %162 = vector.multi_reduction <add>, %161, %cst_70 [1] : vector<16x64xf32> to vector<16xf32>
    %163 = vector.shape_cast %162 : vector<16xf32> to vector<16x1xf32>
    %cst_71 = arith.constant 6.400000e+01 : f32
    %164 = vector.broadcast %cst_71 : f32 to vector<16x1xf32>
    %165 = arith.divf %163, %164 : vector<16x1xf32>
    %166 = vector.broadcast %156 : vector<16x1xf32> to vector<16x64xf32>
    %167 = arith.subf %148, %166 : vector<16x64xf32>
    %cst_72 = arith.constant 9.99999996E-13 : f32
    %168 = vector.broadcast %cst_72 : f32 to vector<16x1xf32>
    %169 = arith.addf %165, %168 : vector<16x1xf32>
    %170 = math.rsqrt %169 : vector<16x1xf32>
    %171 = vector.broadcast %170 : vector<16x1xf32> to vector<16x64xf32>
    %172 = arith.mulf %167, %171 : vector<16x64xf32>
    %173 = vector.broadcast %150 : vector<1x64xf32> to vector<16x64xf32>
    %174 = arith.mulf %172, %173 : vector<16x64xf32>
    %175 = vector.broadcast %152 : vector<1x64xf32> to vector<16x64xf32>
    %176 = arith.addf %174, %175 : vector<16x64xf32>
    %c0_73 = arith.constant 0 : index
    %c0_74 = arith.constant 0 : index
    %177 = vector.load %arg24[%c0_73, %c0_74] : memref<16x64xf32, #tpu.memory_space<vmem>>, vector<16x64xf32>
    tpu.vector_store %arg24[%c0_73, %c0_74], %176 {strides = array<i32>} : memref<16x64xf32, #tpu.memory_space<vmem>>, vector<16x64xf32>,
    %c1_i32 = arith.constant 1 : i32
    %178 = arith.cmpi eq, %arg0, %c1_i32 : i32
    %179 = arith.extui %178 : i1 to i32
    %c0_i32_75 = arith.constant 0 : i32
    %180 = arith.cmpi ne, %179, %c0_i32_75 : i32
    scf.if %180 {
      %181 = vector.extract_strided_slice %176 {offsets = [0, 0], sizes = [1, 64], strides = [1, 1]} : vector<16x64xf32> to vector<1x64xf32>
      %182 = vector.extract_strided_slice %176 {offsets = [8, 0], sizes = [1, 64], strides = [1, 1]} : vector<16x64xf32> to vector<1x64xf32>
      %183 = tpu.concatenate %181, %182 in 0 : vector<1x64xf32>, vector<1x64xf32> -> vector<2x64xf32>
      %c0_76 = arith.constant 0 : index
      %c0_77 = arith.constant 0 : index
      %184 = vector.load %arg18[%c0_76, %c0_77] : memref<64x64xf32, #tpu.memory_space<vmem>>, vector<64x64xf32>
      %cst_78 = arith.constant dense<0.000000e+00> : vector<2x64xf32>
      %185 = tpu.matmul %183, %184, %cst_78 {dimension_numbers = #tpu.dot_dimension_numbers<[1], [0], [0], [1], [0, 0, 1, 1], [], []>} : vector<2x64xf32>, vector<64x64xf32>, vector<2x64xf32> -> vector<2x64xf32>
      %c0_79 = arith.constant 0 : index
      %c0_80 = arith.constant 0 : index
      %186 = vector.load %arg19[%c0_79, %c0_80] : memref<1x64xf32, #tpu.memory_space<vmem>>, vector<1x64xf32>
      %187 = vector.broadcast %186 : vector<1x64xf32> to vector<2x64xf32>
      %188 = arith.addf %185, %187 : vector<2x64xf32>
      %189 = math.tanh %188 : vector<2x64xf32>
      %c0_81 = arith.constant 0 : index
      %c0_82 = arith.constant 0 : index
      %190 = vector.load %arg22[%c0_81, %c0_82] : memref<2x64xf32, #tpu.memory_space<vmem>>, vector<2x64xf32>
      tpu.vector_store %arg22[%c0_81, %c0_82], %189 {strides = array<i32>} : memref<2x64xf32, #tpu.memory_space<vmem>>, vector<2x64xf32>,
      %c0_83 = arith.constant 0 : index
      %c0_84 = arith.constant 0 : index
      %191 = vector.load %arg20[%c0_83, %c0_84] : memref<64x128xf32, #tpu.memory_space<vmem>>, vector<64x128xf32>
      %cst_85 = arith.constant dense<0.000000e+00> : vector<2x128xf32>
      %192 = tpu.matmul %189, %191, %cst_85 {dimension_numbers = #tpu.dot_dimension_numbers<[1], [0], [0], [1], [0, 0, 1, 1], [], []>} : vector<2x64xf32>, vector<64x128xf32>, vector<2x128xf32> -> vector<2x128xf32>
      %c0_86 = arith.constant 0 : index
      %c0_87 = arith.constant 0 : index
      %193 = vector.load %arg21[%c0_86, %c0_87] : memref<1x128xf32, #tpu.memory_space<vmem>>, vector<1x128xf32>
      %194 = vector.broadcast %193 : vector<1x128xf32> to vector<2x128xf32>
      %195 = arith.addf %192, %194 : vector<2x128xf32>
      %c0_88 = arith.constant 0 : index
      %c0_89 = arith.constant 0 : index
      %196 = vector.load %arg23[%c0_88, %c0_89] : memref<2x128xf32, #tpu.memory_space<vmem>>, vector<2x128xf32>
      tpu.vector_store %arg23[%c0_88, %c0_89], %195 {strides = array<i32>} : memref<2x128xf32, #tpu.memory_space<vmem>>, vector<2x128xf32>,
    } else {
    }
    return
  }
  func.func @transform_0(%arg0: i32) -> (i32, i32) {
    %c0_i32 = arith.constant 0 : i32
    %c0_i32_0 = arith.constant 0 : i32
    %c0_i32_1 = arith.constant 0 : i32
    return %c0_i32, %c0_i32_0 : i32, i32
  }
  func.func @transform_1(%arg0: i32) -> (i32, i32) {
    %c0_i32 = arith.constant 0 : i32
    %c0_i32_0 = arith.constant 0 : i32
    %c0_i32_1 = arith.constant 0 : i32
    return %c0_i32, %c0_i32_0 : i32, i32
  }
  func.func @transform_2(%arg0: i32) -> (i32, i32) {
    %c0_i32 = arith.constant 0 : i32
    %c0_i32_0 = arith.constant 0 : i32
    %c0_i32_1 = arith.constant 0 : i32
    return %c0_i32, %c0_i32_0 : i32, i32
  }
  func.func @transform_3(%arg0: i32) -> (i32, i32) {
    %c0_i32 = arith.constant 0 : i32
    %c0_i32_0 = arith.constant 0 : i32
    %c0_i32_1 = arith.constant 0 : i32
    return %c0_i32, %c0_i32_0 : i32, i32
  }
  func.func @transform_4(%arg0: i32) -> (i32, i32) {
    %c0_i32 = arith.constant 0 : i32
    %c0_i32_0 = arith.constant 0 : i32
    %c0_i32_1 = arith.constant 0 : i32
    return %c0_i32, %c0_i32_0 : i32, i32
  }
  func.func @transform_5(%arg0: i32) -> (i32, i32, i32) {
    %c0_i32 = arith.constant 0 : i32
    %c0_i32_0 = arith.constant 0 : i32
    %c0_i32_1 = arith.constant 0 : i32
    return %arg0, %c0_i32, %c0_i32_0 : i32, i32, i32
  }
  func.func @transform_6(%arg0: i32) -> (i32, i32, i32) {
    %c0_i32 = arith.constant 0 : i32
    %c0_i32_0 = arith.constant 0 : i32
    %c0_i32_1 = arith.constant 0 : i32
    return %arg0, %c0_i32, %c0_i32_0 : i32, i32, i32
  }
  func.func @transform_7(%arg0: i32) -> (i32, i32, i32) {
    %c0_i32 = arith.constant 0 : i32
    %c0_i32_0 = arith.constant 0 : i32
    %c0_i32_1 = arith.constant 0 : i32
    return %arg0, %c0_i32, %c0_i32_0 : i32, i32, i32
  }
  func.func @transform_8(%arg0: i32) -> (i32, i32, i32) {
    %c0_i32 = arith.constant 0 : i32
    %c0_i32_0 = arith.constant 0 : i32
    %c0_i32_1 = arith.constant 0 : i32
    return %arg0, %c0_i32, %c0_i32_0 : i32, i32, i32
  }
  func.func @transform_9(%arg0: i32) -> (i32, i32, i32) {
    %c0_i32 = arith.constant 0 : i32
    %c0_i32_0 = arith.constant 0 : i32
    %c0_i32_1 = arith.constant 0 : i32
    return %arg0, %c0_i32, %c0_i32_0 : i32, i32, i32
  }
  func.func @transform_10(%arg0: i32) -> (i32, i32, i32) {
    %c0_i32 = arith.constant 0 : i32
    %c0_i32_0 = arith.constant 0 : i32
    %c0_i32_1 = arith.constant 0 : i32
    return %arg0, %c0_i32, %c0_i32_0 : i32, i32, i32
  }
  func.func @transform_11(%arg0: i32) -> (i32, i32, i32) {
    %c0_i32 = arith.constant 0 : i32
    %c0_i32_0 = arith.constant 0 : i32
    %c0_i32_1 = arith.constant 0 : i32
    return %arg0, %c0_i32, %c0_i32_0 : i32, i32, i32
  }
  func.func @transform_12(%arg0: i32) -> (i32, i32, i32) {
    %c0_i32 = arith.constant 0 : i32
    %c0_i32_0 = arith.constant 0 : i32
    %c0_i32_1 = arith.constant 0 : i32
    return %arg0, %c0_i32, %c0_i32_0 : i32, i32, i32
  }
  func.func @transform_13(%arg0: i32) -> (i32, i32, i32) {
    %c0_i32 = arith.constant 0 : i32
    %c0_i32_0 = arith.constant 0 : i32
    %c0_i32_1 = arith.constant 0 : i32
    return %arg0, %c0_i32, %c0_i32_0 : i32, i32, i32
  }
  func.func @transform_14(%arg0: i32) -> (i32, i32, i32) {
    %c0_i32 = arith.constant 0 : i32
    %c0_i32_0 = arith.constant 0 : i32
    %c0_i32_1 = arith.constant 0 : i32
    return %arg0, %c0_i32, %c0_i32_0 : i32, i32, i32
  }
  func.func @transform_15(%arg0: i32) -> (i32, i32, i32) {
    %c0_i32 = arith.constant 0 : i32
    %c0_i32_0 = arith.constant 0 : i32
    %c0_i32_1 = arith.constant 0 : i32
    return %arg0, %c0_i32, %c0_i32_0 : i32, i32, i32
  }
  func.func @transform_16(%arg0: i32) -> (i32, i32, i32) {
    %c0_i32 = arith.constant 0 : i32
    %c0_i32_0 = arith.constant 0 : i32
    %c0_i32_1 = arith.constant 0 : i32
    return %arg0, %c0_i32, %c0_i32_0 : i32, i32, i32
  }
  func.func @transform_17(%arg0: i32) -> (i32, i32) {
    %c0_i32 = arith.constant 0 : i32
    %c0_i32_0 = arith.constant 0 : i32
    %c0_i32_1 = arith.constant 0 : i32
    return %c0_i32, %c0_i32_0 : i32, i32
  }
  func.func @transform_18(%arg0: i32) -> (i32, i32) {
    %c0_i32 = arith.constant 0 : i32
    %c0_i32_0 = arith.constant 0 : i32
    %c0_i32_1 = arith.constant 0 : i32
    return %c0_i32, %c0_i32_0 : i32, i32
  }
  func.func @transform_19(%arg0: i32) -> (i32, i32) {
    %c0_i32 = arith.constant 0 : i32
    %c0_i32_0 = arith.constant 0 : i32
    %c0_i32_1 = arith.constant 0 : i32
    return %c0_i32, %c0_i32_0 : i32, i32
  }
  func.func @transform_20(%arg0: i32) -> (i32, i32) {
    %c0_i32 = arith.constant 0 : i32
    %c0_i32_0 = arith.constant 0 : i32
    %c0_i32_1 = arith.constant 0 : i32
    return %c0_i32, %c0_i32_0 : i32, i32
  }
  func.func @transform_21(%arg0: i32) -> (i32, i32) {
    %c0_i32 = arith.constant 0 : i32
    %c0_i32_0 = arith.constant 0 : i32
    %c0_i32_1 = arith.constant 0 : i32
    return %c0_i32, %c0_i32_0 : i32, i32
  }
  func.func @transform_22(%arg0: i32) -> (i32, i32) {
    %c0_i32 = arith.constant 0 : i32
    %c0_i32_0 = arith.constant 0 : i32
    %c0_i32_1 = arith.constant 0 : i32
    return %c0_i32, %c0_i32_0 : i32, i32
  }
}

</mosaic_0001>

<bundles_post_ra>
// kernel: bert_text_classification_forward.1
= control target key start
LH: loop header
LB: loop body
LE: loop exit
PB: predicated region body
PF: predicated region fallthrough
CT: control target
= control target key end

     0   :  { %s3494_s0 = inlined_call_operand.vmem [shape: f32[16,64], index: 0, kind: input, shape index: {}]   ;;  %s3495_s1 = inlined_call_operand.vmem [shape: f32[8,64], index: 1, kind: input, shape index: {}]   ;;  %s3496_s2 = inlined_call_operand.vmem [shape: f32[1,64], index: 2, kind: input, shape index: {}]   ;;  %s3497_s3 = inlined_call_operand.vmem [shape: f32[1,64], index: 3, kind: input, shape index: {}]   ;;  %s3498_s4 = inlined_call_operand.vmem [shape: f32[2,8], index: 4, kind: input, shape index: {}]   ;;  %s3499_s5 = inlined_call_operand.vmem [shape: f32[2,64,192], index: 5, kind: input, shape index: {}]   ;;  %s3500_s6 = inlined_call_operand.vmem [shape: f32[2,1,192], index: 6, kind: input, shape index: {}]   ;;  %s3501_s7 = inlined_call_operand.vmem [shape: f32[2,64,64], index: 7, kind: input, shape index: {}]   ;;  %s3502_s8 = inlined_call_operand.vmem [shape: f32[2,1,64], index: 8, kind: input, shape index: {}]   ;;  %s3503_s9 = inlined_call_operand.vmem [shape: f32[2,1,64], index: 9, kind: input, shape index: {}]   ;;  %s3504_s10 = inlined_call_operand.vmem [shape: f32[2,1,64], index: 10, kind: input, shape index: {}]   ;;  %s3505_s11 = inlined_call_operand.vmem [shape: f32[2,64,128], index: 11, kind: input, shape index: {}]   ;;  %s3506_s12 = inlined_call_operand.vmem [shape: f32[2,1,128], index: 12, kind: input, shape index: {}]   ;;  %s3507_s13 = inlined_call_operand.vmem [shape: f32[2,128,64], index: 13, kind: input, shape index: {}]   ;;  %s3508_s14 = inlined_call_operand.vmem [shape: f32[2,1,64], index: 14, kind: input, shape index: {}]   ;;  %s3509_s15 = inlined_call_operand.vmem [shape: f32[2,1,64], index: 15, kind: input, shape index: {}]   ;;  %s3510_s16 = inlined_call_operand.vmem [shape: f32[2,1,64], index: 16, kind: input, shape index: {}]   ;;  %s3511_s17 = inlined_call_operand.vmem [shape: f32[64,64], index: 17, kind: input, shape index: {}]   ;;  %s3512_s18 = inlined_call_operand.vmem [shape: f32[1,64], index: 18, kind: input, shape index: {}]   ;;  %s3513_s19 = inlined_call_operand.vmem [shape: f32[64,128], index: 19, kind: input, shape index: {}]   ;;  %s3514_s20 = inlined_call_operand.vmem [shape: f32[1,128], index: 20, kind: input, shape index: {}]   ;;  %s3515_s21 = inlined_call_operand.hbm [shape: f32[2,64], index: 21, kind: output, shape index: {0}]   ;;  %s3516_s22 = inlined_call_operand.hbm [shape: f32[2,128], index: 22, kind: output, shape index: {1}]  }
   0x1   :  { %3523 = sst [smem:[#allocation10_spill]] %s3494_s0 }
   0x2   :  { %3524 = sst [smem:[#allocation11_spill]] %s3495_s1 }
   0x3   :  { %3525 = sst [smem:[#allocation12_spill]] %s3496_s2 }
   0x4   :  { %3526 = sst [smem:[#allocation13_spill]] %s3497_s3 }
   0x5   :  { %3527 = sst [smem:[#allocation14_spill]] %s3498_s4 }
   0x6   :  { %3528 = sst [smem:[#allocation15_spill]] %s3499_s5 }
   0x7   :  { %3529 = sst [smem:[#allocation16_spill]] %s3500_s6 }
   0x8   :  { %3530 = sst [smem:[#allocation17_spill]] %s3501_s7 }
   0x9   :  { %3531 = sst [smem:[#allocation18_spill]] %s3511_s17 }
   0xa   :  { %3532 = sst [smem:[#allocation19_spill]] %s3512_s18 }
   0xb   :  { %3533 = sst [smem:[#allocation20_spill]] %s3513_s19 }
   0xc   :  { %3534 = sst [smem:[#allocation21_spill]] %s3514_s20 }
   0xd   :  { %3535 = sst [smem:[#allocation22_spill]] %s3515_s21 }
   0xe   :  { %3536 = sst [smem:[#allocation23_spill]] %s3516_s22 }
   0xf   :  { %28 = vsyncpa [#allocation4], 0 }
  0x10   :  { %29 = vsyncpa [#allocation6], 0  ;;  %s3101_s3 = smov 0  }
  0x11 LB: > { %3537 = sst [smem:[#allocation9_spill]] %s2974_s3  ;;  %s3107_s28 = sadd.s32 4294967295, %s2974_s3   ;;  %s2974_s3 = sphi %s3101_s3, %s35_s3  }
  0x12   : > { %p2464_p0 = scmp.ge.s32.totalorder %s2974_s3, 1  ;;  %p702_p1 = scmp.lt.s32.totalorder %s2974_s3, 3 }
  0x14   : > { %p703_p2 = pnand %p2464_p0, %p702_p1 }
  0x15   : > { %p799_p3 = scmp.lt.s32.totalorder (!%p703_p2), %s3107_s28, 1  ;;  %s3538_s1 = sld [smem:[#allocation15_spill]] (!%p703_p2) }
  0x16   : > { %706 = sbr.rel (%p703_p2) target bundleno = 4442 (0x115a), region = 104  ;;  %s3539_s25 = sld [smem:[#allocation16_spill]] (!%p703_p2) }
  0x17   : > { %s3540_s7 = sld [smem:[#allocation17_spill]] (!%p703_p2)  ;;  %p2474_p4 = scmp.ne.s32.totalorder (!%p703_p2), %s3107_s28, 0 }
  0x1d   : > { %s3113_s29 = scalar_select %p799_p3, %s3107_s28, 1 }
  0x1e   : > { %847 = sbr.rel (%p2474_p4) target bundleno = 363 (0x16b), region = 108  ;;  %s3541_s20 = sld [smem:[#allocation11_spill]] (!%p2474_p4)  ;;  %vm855_vm0 = vcmask (!%p2474_p4), 523264  }
  0x1f   : > { %s2513_s30 = sshll.u32 %s3113_s29, 7  ;;  %s2467_s4 = sshll.u32 %s3113_s29, 1 }
  0x20   : > { %s3120_s5 = scalar_lea.vmem %s3538_s1, %s2513_s30  ;;  %s3125_s26 = scalar_lea.vmem %s3539_s25, %s2467_s4 }
  0x21   : > { %s2514_s2 = sshll.u32 %s3113_s29, 6  ;;  %s837_s0 = scalar_lea.vmem %s3508_s14, %s3113_s29 }
  0x22   : > { %s3135_s18 = scalar_lea.vmem %s3540_s7, %s2514_s2  ;;  %s3148_s25 = scalar_lea.vmem %s3505_s11, %s2514_s2 }
  0x23   : > { %s3157_s7 = scalar_lea.vmem %s3507_s13, %s2513_s30  ;;  %s840_s24 = scalar_lea.vmem %s3509_s15, %s3113_s29 }
  0x24   : > { %s843_s6 = scalar_lea.vmem %s3510_s16, %s3113_s29  ;;  %v848_v0 = vld [vmem:[%s3541_s20] sm:$0xff] (!%p2474_p4)  ;;  %s3542_s22 = sld [smem:[#allocation10_spill]] (!%p2474_p4) }
  0x25   : > { %s3543_s4 = sld [smem:[#allocation12_spill]]  ;;  %s3544_s27 = sld [smem:[#allocation13_spill]] }
  0x2a   : > { %v849_v1 = vld [vmem:[%s3542_s22] sm:$0xff]  ;;  %v850_v2 = vld [vmem:[%s3542_s22 + $0x8] sm:$0xff] }
  0x2b   : > { %v851_v3 = vadd.f32 %v849_v1, %v848_v0  ;;  %v852_v4 = vadd.f32 %v850_v2, %v848_v0  ;;  %v2475_v24 = vld [vmem:[%s3543_s4] ss:$0 sm:$0xff] }
  0x2c   : > { %v2476_v26 = vld [vmem:[%s3544_s27] ss:$0 sm:$0xff] }
  0x2d   : > { %v856_v5 = vsel %vm855_vm0, %v851_v3, 0.0  ;;  %v859_v6 = vsel %vm855_vm0, %v852_v4, 0.0 }
  0x2e   : > { %857 = vadd.xlane.f32.xlu0 %v856_v5 }
  0x32   : > { %860 = vadd.xlane.f32.xlu0 %v859_v6 }
  0xbb   : > { %v858_v7 = vpop.xlane.xlu0 %857 }
  0xbc   : > { %v863_v8 = vmul.f32 0.015625, %v858_v7 }
  0xbe   : > { %v865_v9 = vsub.f32 %v851_v3, %v863_v8 }
  0xbf   : > { %v861_v10 = vpop.xlane.xlu0 %860 }
  0xc0   : > { %v864_v11 = vmul.f32 0.015625, %v861_v10  ;;  %v867_v12 = vmul.f32 %v865_v9, %v865_v9 }
  0xc2   : > { %v866_v13 = vsub.f32 %v852_v4, %v864_v11  ;;  %v869_v14 = vsel %vm855_vm0, %v867_v12, 0.0 }
  0xc3   : > { %870 = vadd.xlane.f32.xlu1 %v869_v14 }
  0xc4   : > { %v868_v15 = vmul.f32 %v866_v13, %v866_v13 }
  0xc6   : > { %v872_v16 = vsel %vm855_vm0, %v868_v15, 0.0 }
  0xc7   : > { %873 = vadd.xlane.f32.xlu1 %v872_v16 }
 0x150   : > { %v871_v17 = vpop.xlane.xlu1 %870 }
 0x151   : > { %v875_v18 = vmul.f32 0.015625, %v871_v17 }
 0x153   : > { %v877_v19 = vadd.f32 1e-12, %v875_v18 }
 0x154   : > { %v874_v20 = vpop.xlane.xlu1 %873 }
 0x155   : > { %2874 = vrsqrt.f32 %v877_v19  ;;  %v876_v21 = vmul.f32 0.015625, %v874_v20 }
 0x157   : > { %v878_v22 = vadd.f32 1e-12, %v876_v21 }
 0x159   : > { %2876 = vrsqrt.f32 %v878_v22 }
 0x15f   : > { %v2875_v23 = vpop.eup %2874 }
 0x160   : > { %v881_v25 = vmul.f32 %v2875_v23, %v865_v9 }
 0x162   : > { %v889_v27 = vmul.f32 %v2475_v24, %v881_v25 }
 0x163   : > { %v2877_v28 = vpop.eup %2876 }
 0x164   : > { %v897_v29 = vadd.f32 %v2476_v26, %v889_v27  ;;  %v882_v30 = vmul.f32 %v2877_v28, %v866_v13 }
 0x166   : > { %899 = vst.msk [vmem:[#allocation2] sm:$0xff] %vm855_vm0, %v897_v29  ;;  %v890_v31 = vmul.f32 %v2475_v24, %v882_v30 }
 0x168   : > { %v898_v32 = vadd.f32 %v2476_v26, %v890_v31 }
 0x16a   : > { %900 = vst.msk [vmem:[#allocation2 + $0x8] sm:$0xff] %vm855_vm0, %v898_v32 }
 0x16b PF: > { %v904_v33 = vld [vmem:[%s3120_s5 + $0x8] sm:$0xff]  ;;  %v906_v34 = vld [vmem:[%s3120_s5 + $0x18] sm:$0xff]  ;;  %v903_v35 = vld [vmem:[%s3120_s5] sm:$0xff]  ;;  %v2976_v40 = vmov 0.0   ;;  %vm931_vm1 = vcmask 523264   ;;  %v921_v59 = vlaneseq  ;;  %vm2977_vm2 = vmmov 0   ;;  %s3547_s4 = scalar_lea.vmem %s3503_s9, %s3113_s29  ;;  %s3548_s27 = scalar_lea.vmem %s3504_s10, %s3113_s29 }
 0x16c   : > { %v2740_v36 = vpack.c.bf16 %v906_v34, %v904_v33  ;;  %v905_v37 = vld [vmem:[%s3120_s5 + $0x10] sm:$0xff]  ;;  %v908_v38 = vld [vmem:[%s3120_s5 + $0x28] sm:$0xff]  ;;  %v910_v39 = vld [vmem:[%s3120_s5 + $0x38] sm:$0xff]  ;;  %1002 = vmatprep.mubr.f32.mxu0 %v2976_v40  ;;  %2589 = vmatprep.subr.mxu1 %v2976_v40  ;;  %s2979_s20 = smov 64   ;;  %vm1023_vm3 = vcmask 261120   ;;  %s3545_s21 = sld [smem:[#allocation14_spill]] }
 0x16d   : > { %v2742_v41 = vpack.c.bf16 %v905_v37, %v903_v35  ;;  %v2744_v42 = vpack.c.bf16 %v910_v39, %v908_v38  ;;  %v907_v43 = vld [vmem:[%s3120_s5 + $0x20] sm:$0xff]  ;;  %v909_v44 = vld [vmem:[%s3120_s5 + $0x30] sm:$0xff]  ;;  %v912_v45 = vld [vmem:[%s3120_s5 + $0x48] sm:$0xff]  ;;  %v3217_v60 = vshrl.u32 %v921_v59, 7  ;;  %2591 = vmatprep.mubr.msk.f32.mxu1 %vm2977_vm2, %v2976_v40  ;;  %vm1098_vm4 = vcmask 64512   ;;  %s2980_s17 = smov 96  }
 0x16e   : > { %2741 = vmatprep.subr.bf16.mxu0 %v2740_v36  ;;  %v914_v46 = vld [vmem:[%s3120_s5 + $0x58] sm:$0xff]  ;;  %v2746_v47 = vpack.c.bf16 %v909_v44, %v907_v43  ;;  %v911_v49 = vld [vmem:[%s3120_s5 + $0x40] sm:$0xff]  ;;  %v913_v50 = vld [vmem:[%s3120_s5 + $0x50] sm:$0xff]  ;;  %p2502_p5 = scmp.ne.s32.totalorder %s3107_s28, 1 }
 0x16f   : > { %2743 = vmatpush1.bf16.msra.mxu0 %v2742_v41  ;;  %v2748_v48 = vpack.c.bf16 %v914_v46, %v912_v45  ;;  %v916_v51 = vld [vmem:[%s3120_s5 + $0x68] sm:$0xff]  ;;  %v918_v52 = vld [vmem:[%s3120_s5 + $0x78] sm:$0xff]  ;;  %v2750_v53 = vpack.c.bf16 %v913_v50, %v911_v49  ;;  %v915_v55 = vld [vmem:[%s3120_s5 + $0x60] sm:$0xff]  ;;  %v923_v61 = vsub.s32 0, %v3217_v60  ;;  %v927_v3 = vsub.s32 1, %v3217_v60  ;;  %s3553_s23 = sld [smem:[#allocation21_spill]] (!%p2502_p5) }
 0x170   : > { %2745 = vmatprep.subr.bf16.mxu0 %v2744_v42  ;;  %v2752_v54 = vpack.c.bf16 %v918_v52, %v916_v51  ;;  %v917_v56 = vld [vmem:[%s3120_s5 + $0x70] sm:$0xff]  ;;  %v3211_v58 = vld [vmem:[#allocation2] sm:$0xff]  ;;  %s2978_s5 = smov 32   ;;  %vm2982_vm5 = vmmov (!%p2502_p5), 0   ;;  %vm2100_vm6 = vcmask (!%p2502_p5), 1040384   ;;  %vm2191_vm7 = vcmask (!%p2502_p5), 517120  }
 0x171   : > { %v2754_v57 = vpack.c.bf16 %v917_v56, %v915_v55  ;;  %v919_v62 = vld [vmem:[%s3125_s26] sm:$0x3]  ;;  %v3247_v18 = vld [vmem:[#allocation2 + $0x8] sm:$0xff]  ;;  %s3549_s26 = scalar_lea.vmem %s3506_s12, %s3113_s29 }
 0x172   : > { %v3223_v63 = vrot.slane %v919_v62, %v923_v61  ;;  %v928_v4 = vrot.slane %v919_v62, %v927_v3  ;;  %v3240_v7 = vld [vmem:[%s3545_s21] sm:$0x3] }
 0x173   : > { %2747 = vmatpush1.bf16.msra.mxu0 %v2746_v47  ;;  %v1019_v8 = vrot.slane %v3240_v7, %v923_v61  ;;  %v1357_v49 = vrot.slane %v3240_v7, %v927_v3 }
 0x174   : > { %2749 = vmatprep.subr.bf16.mxu0 %v2748_v48 }
 0x177   : > { %2751 = vmatpush1.bf16.msra.mxu0 %v2750_v53 }
 0x178   : > { %2753 = vmatprep.subr.bf16.mxu0 %v2752_v54 }
 0x17b   : > { %2755 = vmatpush1.bf16.msra.mxu0 %v2754_v57 }
 0x17c   : > { %2614 = vmatprep.subr.mxu0 %v2976_v40 }
 0x17e   : > { %2477 = vmatmul.mubr.msk.f32.vlgmr.msra.gmra.mrb[0].mxu0 %vm931_vm1, %v3211_v58 }
 0x17f   : > { %1008 = vmatprep.mubr.f32.mxu0 %v2976_v40 }
 0x182   : > { %2478 = vmatmul.mubr.msk.f32.gmra.mrb[2].mxu0 %vm931_vm1, %v3247_v18 }
 0x183   : > { %2616 = vmatprep.mubr.msk.f32.mxu0 %vm2977_vm2, %v2976_v40 }
 0x251   : > { %v1004_v0 = vpop.f32.mrb[0].mxu0 }
 0x252   : > { %v1005_v1 = vadd.f32 %v1004_v0, %v3223_v63  ;;  %v1006_v2 = vpop.f32.mrb[1].mxu0 }
 0x253   : > { %v1007_v6 = vadd.f32 %v1006_v2, %v928_v4 }
 0x254   : > { %1185 = vrot.lane.b32.xlu1 %v1005_v1, %s2978_s5  ;;  %1021 = vrot.lane.b32.xlu0 %v1005_v1, %s2979_s20 }
 0x255   : > { %v1010_v31 = vpop.f32.mrb[2].mxu0 }
 0x256   : > { %v1011_v32 = vadd.f32 %v1010_v31, %v3223_v63  ;;  %v1012_v33 = vpop.f32.mrb[3].mxu0 }
 0x257   : > { %v1013_v34 = vadd.f32 %v1012_v33, %v928_v4 }
 0x259   : > { %2615 = vmatpush3.msra.mxu0 %v1013_v34 }
 0x25a   : > { %2624 = vmatprep.subr.mxu0 %v2976_v40 }
 0x2c6   : > { %v1022_v5 = vpop.permute.xlu0 %1021  ;;  %v1186_v19 = vpop.permute.xlu1 %1185 }
 0x2c7   : > { %2590 = vmatpush3.xpose.msk.msra.mxu1 %vm1023_vm3, %v1022_v5 }
 0x2c8   : > { %2594 = vmatprep.subr.mxu1 %v2976_v40 }
 0x2ca   : > { %2592 = vmatmul.mubr.msk.f32.vlgmr.msra.gmra.mrb[0].mxu1 %vm1023_vm3, %v1005_v1 }
 0x2cb   : > { %2595 = vmatpush3.msra.mxu1 %v1007_v6  ;;  %2596 = vmatprep.mubr.msk.f32.mxu1 %vm2977_vm2, %v2976_v40 }
 0x2cc   : > { %2599 = vmatprep.subr.mxu1 %v2976_v40 }
 0x39d   : > { %v1094_v9 = vpop.f32.mrb[0].mxu1 }
 0x39e   : > { %v1095_v10 = vadd.f32 %v1094_v9, %v1019_v8  ;;  %v2593_v11 = vpop.f32.mrb[1].mxu1 }
 0x3a0   : > { %v1099_v12 = vsel %vm1098_vm4, %v1095_v10, -inf }
 0x3a1   : > { %1100 = vmax.xlane.f32.xlu0 %v1099_v12 }
 0x3b7   : > { %1273 = vrot.lane.b32.xlu0 %v1007_v6, %s2980_s17 }
 0x42e   : > { %v1101_v13 = vpop.xlane.xlu0 %1100 }
 0x42f   : > { %v1102_v14 = vsub.f32 %v1095_v10, %v1101_v13 }
 0x431   : > { %v1103_v15 = vmul.f32 1.442695, %v1102_v14  ;;  %v1690_v14 = vld [vmem:[%s3135_s18] sm:$0xff] }
 0x432   : > { %v1274_v24 = vpop.permute.xlu0 %1273 }
 0x433   : > { %2878 = vpow2.f32 %v1103_v15  ;;  %v1691_v15 = vld [vmem:[%s3135_s18 + $0x8] sm:$0xff] }
 0x43d   : > { %v2879_v16 = vpop.eup %2878 }
 0x43e   : > { %v1105_v17 = vsel %vm1098_vm4, %v2879_v16, 0.0 }
 0x43f   : > { %1106 = vadd.xlane.f32.xlu1 %v1105_v17  ;;  %v2756_v17 = vpack.c.bf16 %v1691_v15, %v1690_v14 }
 0x450   : > { %1183 = vrot.lane.b32.xlu1 %v1005_v1, %s2980_s17 }
 0x4cc   : > { %v1107_v20 = vpop.xlane.xlu1 %1106 }
 0x4cd   : > { %2880 = vrcp.f32 %v1107_v20 }
 0x4d0   : > { %v1184_v23 = vpop.permute.xlu1 %1183 }
 0x4d7   : > { %v2881_v21 = vpop.eup %2880 }
 0x4d8   : > { %v1109_v22 = vmul.f32 %v2881_v21, %v2879_v16  ;;  %v1692_v16 = vld [vmem:[%s3135_s18 + $0x10] sm:$0xff]  ;;  %v1694_v21 = vld [vmem:[%s3135_s18 + $0x20] sm:$0xff] }
 0x4da   : > { %2597 = vmatmul.mubr.msk.f32.vlgmr.msra.gmra.mrb[2].mxu1 %vm1098_vm4, %v1109_v22  ;;  %v1695_v22 = vld [vmem:[%s3135_s18 + $0x28] sm:$0xff] }
 0x4db   : > { %2600 = vmatpush3.xpose.msk.msra.mxu1 %vm1023_vm3, %v1186_v19  ;;  %2601 = vmatprep.mubr.msk.f32.mxu1 %vm2977_vm2, %v2976_v40  ;;  %v1693_v19 = vld [vmem:[%s3135_s18 + $0x18] sm:$0xff] }
 0x4dc   : > { %2604 = vmatprep.subr.mxu1 %v2976_v40  ;;  %v2760_v20 = vpack.c.bf16 %v1693_v19, %v1692_v16  ;;  %v1949_v19 = vld [vmem:[%s3157_s7 + $0x10] sm:$0xff] }
 0x4de   : > { %2602 = vmatmul.mubr.msk.f32.vlgmr.msra.gmra.mrb[4].mxu1 %vm1023_vm3, %v1184_v23  ;;  %v1696_v23 = vld [vmem:[%s3135_s18 + $0x30] sm:$0xff] }
 0x4df   : > { %2605 = vmatpush3.msra.mxu1 %v1274_v24  ;;  %2606 = vmatprep.mubr.msk.f32.mxu1 %vm2977_vm2, %v2976_v40  ;;  %v1697_v24 = vld [vmem:[%s3135_s18 + $0x38] sm:$0xff]  ;;  %s3546_s18 = scalar_lea.vmem %s3502_s8, %s3113_s29 }
 0x4e0   : > { %2609 = vmatprep.subr.mxu1 %v2976_v40 }
 0x5ad   : > { %v3262_v25 = vpop.f32.mrb[2].mxu1 }
 0x5ae   : > { %v2598_v26 = vpop.f32.mrb[3].mxu1 }
 0x5b1   : > { %v1257_v27 = vpop.f32.mrb[4].mxu1 }
 0x5b2   : > { %v1258_v28 = vadd.f32 %v1257_v27, %v1019_v8  ;;  %v2603_v29 = vpop.f32.mrb[5].mxu1 }
 0x5b4   : > { %v1261_v30 = vsel %vm1098_vm4, %v1258_v28, -inf }
 0x5b5   : > { %1262 = vmax.xlane.f32.xlu1 %v1261_v30 }
 0x5c6   : > { %1521 = vrot.lane.b32.xlu1 %v1011_v32, %s2978_s5 }
 0x642   : > { %v1263_v35 = vpop.xlane.xlu1 %1262 }
 0x643   : > { %v1264_v36 = vsub.f32 %v1258_v28, %v1263_v35 }
 0x645   : > { %v1265_v37 = vmul.f32 1.442695, %v1264_v36 }
 0x646   : > { %v1522_v45 = vpop.permute.xlu1 %1521 }
 0x647   : > { %2882 = vpow2.f32 %v1265_v37 }
 0x651   : > { %v2883_v38 = vpop.eup %2882 }
 0x652   : > { %v1267_v39 = vsel %vm1098_vm4, %v2883_v38, 0.0 }
 0x653   : > { %1268 = vadd.xlane.f32.xlu0 %v1267_v39 }
 0x669   : > { %1359 = vrot.lane.b32.xlu0 %v1011_v32, %s2979_s20 }
 0x66d   : > { %1519 = vrot.lane.b32.xlu0 %v1011_v32, %s2980_s17 }
 0x6e0   : > { %v1269_v41 = vpop.xlane.xlu0 %1268 }
 0x6e1   : > { %2884 = vrcp.f32 %v1269_v41 }
 0x6e4   : > { %v1360_v44 = vpop.permute.xlu0 %1359 }
 0x6e8   : > { %v1520_v46 = vpop.permute.xlu0 %1519 }
 0x6eb   : > { %v2885_v42 = vpop.eup %2884 }
 0x6ec   : > { %v1271_v43 = vmul.f32 %v2885_v42, %v2883_v38 }
 0x6ee   : > { %2607 = vmatmul.mubr.msk.f32.vlgmr.msra.gmra.mrb[6].mxu1 %vm1098_vm4, %v1271_v43 }
 0x6ef   : > { %2610 = vmatpush3.xpose.msk.msra.mxu1 %vm1023_vm3, %v1360_v44  ;;  %2611 = vmatprep.mubr.msk.f32.mxu1 %vm2977_vm2, %v2976_v40 }
 0x6f0   : > { %2619 = vmatprep.subr.mxu1 %v2976_v40 }
 0x6f2   : > { %2612 = vmatmul.mubr.msk.f32.vlgmr.msra.gmra.mrb[8].mxu1 %vm1023_vm3, %v1011_v32  ;;  %v2491_v32 = vld [vmem:[%s3546_s18] ss:$0 sm:$0xff]  ;;  %s3550_s18 = sld [smem:[#allocation18_spill]] (!%p2502_p5) }
 0x6f3   : > { %2620 = vmatpush3.xpose.msk.msra.mxu1 %vm1023_vm3, %v1522_v45  ;;  %2621 = vmatprep.mubr.msk.f32.mxu1 %vm2977_vm2, %v2976_v40 }
 0x6f6   : > { %2622 = vmatmul.mubr.msk.f32.vlgmr.msra.gmra.mrb[10].mxu1 %vm1023_vm3, %v1520_v46 }
 0x7c1   : > { %v1345_v47 = vpop.f32.mrb[6].mxu1 }
 0x7c2   : > { %v2608_v48 = vpop.f32.mrb[7].mxu1 }
 0x7c5   : > { %v1431_v50 = vpop.f32.mrb[8].mxu1 }
 0x7c6   : > { %v1432_v51 = vadd.f32 %v1431_v50, %v1357_v49  ;;  %v2613_v52 = vpop.f32.mrb[9].mxu1  ;;  %v1833_v50 = vld [vmem:[%s3148_s25] sm:$0xff] }
 0x7c8   : > { %v1435_v53 = vsel %vm1098_vm4, %v1432_v51, -inf }
 0x7c9   : > { %1436 = vmax.xlane.f32.xlu0 %v1435_v53  ;;  %v1593_v54 = vpop.f32.mrb[10].mxu1  ;;  %v1835_v53 = vld [vmem:[%s3148_s25 + $0x10] sm:$0xff] }
 0x7ca   : > { %v1594_v55 = vadd.f32 %v1593_v54, %v1357_v49  ;;  %v2623_v56 = vpop.f32.mrb[11].mxu1  ;;  %v1836_v54 = vld [vmem:[%s3148_s25 + $0x18] sm:$0xff] }
 0x7cb   : > { %v1837_v56 = vld [vmem:[%s3148_s25 + $0x20] sm:$0xff] }
 0x7cc   : > { %v1597_v57 = vsel %vm1098_vm4, %v1594_v55, -inf }
 0x7cd   : > { %1598 = vmax.xlane.f32.xlu1 %v1597_v57  ;;  %v1838_v57 = vld [vmem:[%s3148_s25 + $0x28] sm:$0xff] }
 0x7de   : > { %1350 = vrot.lane.b32.xlu1 %v1345_v47, %s2978_s5 }
 0x856   : > { %v1437_v59 = vpop.xlane.xlu0 %1436 }
 0x857   : > { %v1438_v61 = vsub.f32 %v1432_v51, %v1437_v59  ;;  %v1834_v51 = vld [vmem:[%s3148_s25 + $0x8] sm:$0xff]  ;;  %v2780_v59 = vpack.c.bf16 %v1838_v57, %v1837_v56 }
 0x858   : > { %v2772_v52 = vpack.c.bf16 %v1834_v51, %v1833_v50 }
 0x859   : > { %v1439_v62 = vmul.f32 1.442695, %v1438_v61  ;;  %v1839_v61 = vld [vmem:[%s3148_s25 + $0x30] sm:$0xff] }
 0x85a   : > { %v1599_v60 = vpop.xlane.xlu1 %1598 }
 0x85b   : > { %2886 = vpow2.f32 %v1439_v62  ;;  %v1600_v63 = vsub.f32 %v1594_v55, %v1599_v60  ;;  %v2776_v55 = vpack.c.bf16 %v1836_v54, %v1835_v53  ;;  %v1840_v62 = vld [vmem:[%s3148_s25 + $0x38] sm:$0xff] }
 0x85c   : > { %v2784_v60 = vpack.c.bf16 %v1840_v62, %v1839_v61 }
 0x85d   : > { %v1601_v0 = vmul.f32 1.442695, %v1600_v63  ;;  %v1947_v63 = vld [vmem:[%s3157_s7] sm:$0xff] }
 0x85e   : > { %v1351_v11 = vpop.permute.xlu1 %1350 }
 0x85f   : > { %2888 = vpow2.f32 %v1601_v0  ;;  %v1353_v13 = vsel %vm1023_vm3, %v3262_v25, %v1351_v11  ;;  %v2768_v25 = vpack.c.bf16 %v1697_v24, %v1696_v23  ;;  %v1948_v0 = vld [vmem:[%s3157_s7 + $0x8] sm:$0xff]  ;;  %v1953_v24 = vld [vmem:[%s3157_s7 + $0x30] sm:$0xff] }
 0x865   : > { %v2887_v1 = vpop.eup %2886 }
 0x866   : > { %v1441_v2 = vsel %vm1098_vm4, %v2887_v1, 0.0 }
 0x867   : > { %1442 = vadd.xlane.f32.xlu0 %v1441_v2 }
 0x869   : > { %v2889_v3 = vpop.eup %2888 }
 0x86a   : > { %v1603_v4 = vsel %vm1098_vm4, %v2889_v3, 0.0 }
 0x86b   : > { %1604 = vadd.xlane.f32.xlu0 %v1603_v4 }
 0x881   : > { %1609 = vrot.lane.b32.xlu0 %v1013_v34, %s2980_s17  ;;  %s3552_s17 = sld [smem:[#allocation19_spill]] (!%p2502_p5) }
 0x8f4   : > { %v1443_v5 = vpop.xlane.xlu0 %1442 }
 0x8f5   : > { %2890 = vrcp.f32 %v1443_v5 }
 0x8f8   : > { %v1605_v6 = vpop.xlane.xlu0 %1604 }
 0x8f9   : > { %2892 = vrcp.f32 %v1605_v6 }
 0x8fc   : > { %v1610_v9 = vpop.permute.xlu0 %1609 }
 0x8ff   : > { %v2891_v7 = vpop.eup %2890 }
 0x900   : > { %v1445_v8 = vmul.f32 %v2891_v7, %v2887_v1  ;;  %v2788_v1 = vpack.c.bf16 %v1948_v0, %v1947_v63 }
 0x902   : > { %2617 = vmatmul.mubr.msk.f32.vlgmr.msra.gmra.mrb[4].mxu0 %vm1098_vm4, %v1445_v8  ;;  %2789 = vmatprep.subr.bf16.mxu1 %v2788_v1 }
 0x903   : > { %v2893_v10 = vpop.eup %2892  ;;  %2625 = vmatpush3.msra.mxu0 %v1610_v9  ;;  %2626 = vmatprep.mubr.msk.f32.mxu0 %vm2977_vm2, %v2976_v40  ;;  %v2764_v40 = vpack.c.bf16 %v1695_v22, %v1694_v21  ;;  %v2494_v9 = vld [vmem:[%s3547_s4] ss:$0 sm:$0xff] }
 0x904   : > { %v1607_v12 = vmul.f32 %v2893_v10, %v2889_v3  ;;  %2757 = vmatprep.subr.bf16.mxu0 %v2756_v17  ;;  %2791 = vmatpush3.bf16.msra.mxu1 %v2788_v1  ;;  %v1951_v22 = vld [vmem:[%s3157_s7 + $0x20] sm:$0xff] }
 0x906   : > { %2627 = vmatmul.mubr.msk.f32.vlgmr.msra.gmra.mrb[6].mxu0 %vm1098_vm4, %v1607_v12 }
 0x907   : > { %2645 = vmatprep.mubr.msk.f32.mxu0 %vm931_vm1, %v1353_v13  ;;  %2759 = vmatpush3.bf16.msra.mxu0 %v2756_v17  ;;  %v2495_v13 = vld [vmem:[%s3548_s27] ss:$0 sm:$0xff] }
 0x908   : > { %2761 = vmatprep.subr.bf16.mxu0 %v2760_v20 }
 0x90b   : > { %2763 = vmatpush3.bf16.msra.mxu0 %v2760_v20  ;;  %v1950_v20 = vld [vmem:[%s3157_s7 + $0x18] sm:$0xff] }
 0x90c   : > { %2765 = vmatprep.subr.bf16.mxu0 %v2764_v40  ;;  %v2792_v21 = vpack.c.bf16 %v1950_v20, %v1949_v19 }
 0x90e   : > { %2793 = vmatprep.subr.bf16.mxu1 %v2792_v21 }
 0x90f   : > { %2767 = vmatpush3.bf16.msra.mxu0 %v2764_v40  ;;  %2795 = vmatpush3.bf16.msra.mxu1 %v2792_v21  ;;  %v1952_v40 = vld [vmem:[%s3157_s7 + $0x28] sm:$0xff] }
 0x910   : > { %2769 = vmatprep.subr.bf16.mxu0 %v2768_v25  ;;  %v2796_v23 = vpack.c.bf16 %v1952_v40, %v1951_v22 }
 0x912   : > { %2797 = vmatprep.subr.bf16.mxu1 %v2796_v23 }
 0x913   : > { %2771 = vmatpush3.bf16.msra.mxu0 %v2768_v25  ;;  %2799 = vmatpush3.bf16.msra.mxu1 %v2796_v23  ;;  %v1954_v25 = vld [vmem:[%s3157_s7 + $0x38] sm:$0xff] }
 0x914   : > { %2773 = vmatprep.subr.bf16.mxu0 %v2772_v52 }
 0x9d5   : > { %v1515_v26 = vpop.f32.mrb[4].mxu0 }
 0x9d6   : > { %v2618_v27 = vpop.f32.mrb[5].mxu0 }
 0x9d7   : > { %v1955_v27 = vld [vmem:[%s3157_s7 + $0x40] sm:$0xff] }
 0x9d9   : > { %v1681_v28 = vpop.f32.mrb[6].mxu0 }
 0x9da   : > { %1686 = vrot.lane.b32.xlu0 %v1681_v28, %s2978_s5  ;;  %v2628_v29 = vpop.f32.mrb[7].mxu0  ;;  %v1956_v28 = vld [vmem:[%s3157_s7 + $0x48] sm:$0xff]  ;;  %s3551_s5 = sld [smem:[#allocation20_spill]] (!%p2502_p5) }
 0x9db   : > { %v2804_v29 = vpack.c.bf16 %v1956_v28, %v1955_v27  ;;  %v2501_v27 = vld [vmem:[%s843_s6] ss:$0 sm:$0xff] }
 0xa4c   : > { %v1687_v30 = vpop.permute.xlu0 %1686 }
 0xa4d   : > { %v1689_v31 = vsel %vm1023_vm3, %v1515_v26, %v1687_v30  ;;  %v2800_v26 = vpack.c.bf16 %v1954_v25, %v1953_v24  ;;  %v1957_v30 = vld [vmem:[%s3157_s7 + $0x50] sm:$0xff]  ;;  %v2500_v24 = vld [vmem:[%s840_s24] ss:$0 sm:$0xff] }
 0xa4e   : > { %2646 = vmatmul.mubr.msk.f32.vlgmr.msra.gmra.mrb[8].mxu0 %vm931_vm1, %v1689_v31  ;;  %v1958_v31 = vld [vmem:[%s3157_s7 + $0x58] sm:$0xff] }
 0xa4f   : > { %2775 = vmatpush3.bf16.msra.mxu0 %v2772_v52  ;;  %2801 = vmatprep.subr.bf16.mxu1 %v2800_v26 }
 0xa50   : > { %2777 = vmatprep.subr.bf16.mxu0 %v2776_v55  ;;  %2803 = vmatpush3.bf16.msra.mxu1 %v2800_v26 }
 0xa51   : > { %2805 = vmatprep.subr.bf16.mxu1 %v2804_v29 }
 0xa53   : > { %2779 = vmatpush3.bf16.msra.mxu0 %v2776_v55 }
 0xa54   : > { %2781 = vmatprep.subr.bf16.mxu0 %v2780_v59  ;;  %2807 = vmatpush3.bf16.msra.mxu1 %v2804_v29 }
 0xa57   : > { %2783 = vmatpush3.bf16.msra.mxu0 %v2780_v59 }
 0xa58   : > { %2785 = vmatprep.subr.bf16.mxu0 %v2784_v60 }
 0xa5b   : > { %2787 = vmatpush3.bf16.msra.mxu0 %v2784_v60  ;;  %v2499_v60 = vld [vmem:[%s837_s0] ss:$0 sm:$0xff] }
 0xb21   : > { %v2647_v33 = vpop.f32.mrb[8].mxu0 }
 0xb22   : > { %v1783_v34 = vadd.f32 %v2647_v33, %v2491_v32  ;;  %v1777_v35 = vpop.f32.mrb[9].mxu0  ;;  %v1959_v33 = vld [vmem:[%s3157_s7 + $0x60] sm:$0xff] }
 0xb23   : > { %v1778_v36 = vadd.f32 %v2491_v32, %v1777_v35  ;;  %v2808_v32 = vpack.c.bf16 %v1958_v31, %v1957_v30 }
 0xb24   : > { %v1787_v37 = vadd.f32 %v1783_v34, %v3247_v18  ;;  %v1960_v34 = vld [vmem:[%s3157_s7 + $0x68] sm:$0xff] }
 0xb25   : > { %v1786_v38 = vadd.f32 %v1778_v36, %v3211_v58  ;;  %2809 = vmatprep.subr.bf16.mxu1 %v2808_v32  ;;  %v2812_v35 = vpack.c.bf16 %v1960_v34, %v1959_v33  ;;  %v1961_v36 = vld [vmem:[%s3157_s7 + $0x70] sm:$0xff]  ;;  %v2102_v33 = vld [vmem:[%s3550_s18] sm:$0xff] (!%p2502_p5)  ;;  %v2103_v34 = vld [vmem:[%s3550_s18 + $0x8] sm:$0xff] (!%p2502_p5) }
 0xb26   : > { %v1793_v39 = vsel %vm931_vm1, %v1787_v37, 0.0  ;;  %2811 = vmatpush3.bf16.msra.mxu1 %v2808_v32 }
 0xb27   : > { %1794 = vadd.xlane.f32.xlu0 %v1793_v39  ;;  %v1790_v41 = vsel %vm931_vm1, %v1786_v38, 0.0  ;;  %2813 = vmatprep.subr.bf16.mxu1 %v2812_v35  ;;  %v2496_v39 = vld [vmem:[%s3549_s26] ss:$0 sm:$0xff] }
 0xb28   : > { %1791 = vadd.xlane.f32.xlu1 %v1790_v41 }
 0xb2a   : > { %2815 = vmatpush3.bf16.msra.mxu1 %v2812_v35  ;;  %v2104_v35 = vld [vmem:[%s3550_s18 + $0x10] sm:$0xff] (!%p2502_p5) }
 0xbb4   : > { %v1795_v42 = vpop.xlane.xlu0 %1794 }
 0xbb5   : > { %v1798_v43 = vmul.f32 0.015625, %v1795_v42  ;;  %v1792_v44 = vpop.xlane.xlu1 %1791 }
 0xbb6   : > { %v1797_v45 = vmul.f32 0.015625, %v1792_v44 }
 0xbb7   : > { %v1800_v46 = vsub.f32 %v1787_v37, %v1798_v43  ;;  %v1962_v37 = vld [vmem:[%s3157_s7 + $0x78] sm:$0xff] }
 0xbb8   : > { %v1799_v47 = vsub.f32 %v1786_v38, %v1797_v45  ;;  %v2816_v38 = vpack.c.bf16 %v1962_v37, %v1961_v36  ;;  %v2981_v36 = vmov (!%p2502_p5), 0.0|0.0   ;;  %v2821_v37 = vpack.c.bf16 (!%p2502_p5), %v2103_v34, %v2102_v33 }
 0xbb9   : > { %v1802_v48 = vmul.f32 %v1800_v46, %v1800_v46  ;;  %2820 = vmatprep.subr.bf16.mxu0 (!%p2502_p5), %v2981_v36 }
 0xbba   : > { %v1801_v18 = vmul.f32 %v1799_v47, %v1799_v47  ;;  %2817 = vmatprep.subr.bf16.mxu1 %v2816_v38 }
 0xbbb   : > { %v1806_v58 = vsel %vm931_vm1, %v1802_v48, 0.0  ;;  %2819 = vmatpush3.bf16.msra.mxu1 %v2816_v38  ;;  %v2105_v38 = vld [vmem:[%s3550_s18 + $0x18] sm:$0xff] (!%p2502_p5) }
 0xbbc   : > { %1807 = vadd.xlane.f32.xlu1 %v1806_v58  ;;  %v1803_v49 = vsel %vm931_vm1, %v1801_v18, 0.0  ;;  %2832 = vmatprep.subr.bf16.mxu1 (!%p2502_p5), %v2981_v36 }
 0xbbd   : > { %1804 = vadd.xlane.f32.xlu0 %v1803_v49 }
 0xc49   : > { %v1808_v2 = vpop.xlane.xlu1 %1807 }
 0xc4a   : > { %v1810_v3 = vmul.f32 0.015625, %v1808_v2  ;;  %v1805_v4 = vpop.xlane.xlu0 %1804 }
 0xc4b   : > { %v1809_v5 = vmul.f32 0.015625, %v1805_v4 }
 0xc4c   : > { %v1812_v6 = vadd.f32 1e-12, %v1810_v3 }
 0xc4d   : > { %v1811_v7 = vadd.f32 1e-12, %v1809_v5 }
 0xc4e   : > { %2894 = vrsqrt.f32 %v1812_v6 }
 0xc4f   : > { %2896 = vrsqrt.f32 %v1811_v7 }
 0xc58   : > { %v2895_v8 = vpop.eup %2894 }
 0xc59   : > { %v2897_v10 = vpop.eup %2896  ;;  %v1816_v11 = vmul.f32 %v2895_v8, %v1800_v46 }
 0xc5a   : > { %v1815_v12 = vmul.f32 %v2897_v10, %v1799_v47 }
 0xc5b   : > { %v1824_v14 = vmul.f32 %v2494_v9, %v1816_v11 }
 0xc5c   : > { %v1823_v15 = vmul.f32 %v2494_v9, %v1815_v12 }
 0xc5d   : > { %v3341_v17 = vadd.f32 %v2495_v13, %v1824_v14 }
 0xc5e   : > { %v3339_v16 = vadd.f32 %v2495_v13, %v1823_v15 }
 0xc60   : > { %2664 = vmatprep.mubr.msk.f32.mxu0 %vm931_vm1, %v3339_v16 }
 0xc61   : > { %2665 = vmatmul.mubr.msk.f32.vlgmr.msra.gmra.mrb[10].mxu0 %vm931_vm1, %v3341_v17 }
 0xc62   : > { %2822 = vmatpush3.bf16.msra.mxu0 (!%p2502_p5), %v2821_v37 }
 0xc63   : > { %2823 = vmatprep.subr.bf16.mxu0 (!%p2502_p5), %v2981_v36 }
 0xd34   : > { %v2666_v41 = vpop.f32.mrb[10].mxu0 }
 0xd35   : > { %v1926_v42 = vadd.f32 %v2666_v41, %v2496_v39  ;;  %v1920_v43 = vpop.f32.mrb[11].mxu0  ;;  %v2193_v41 = vld [vmem:[%s3551_s5] sm:$0xff] (!%p2502_p5) }
 0xd36   : > { %v1921_v44 = vadd.f32 %v2496_v39, %v1920_v43  ;;  %v2983_v39 = vmov (!%p2502_p5), 0.0   ;;  %v2194_v43 = vld [vmem:[%s3551_s5 + $0x8] sm:$0xff] (!%p2502_p5) }
 0xd37   : > { %v1932_v45 = vmul.f32 0.044715, %v1926_v42  ;;  %v1930_v59 = vmul.f32 0.5, %v1926_v42  ;;  %2718 = vmatprep.mubr.msk.f32.mxu0 (!%p2502_p5), %vm2982_vm5, %v2983_v39 }
 0xd38   : > { %v1931_v46 = vmul.f32 0.044715, %v1921_v44  ;;  %v1929_v56 = vmul.f32 0.5, %v1921_v44 }
 0xd39   : > { %v1934_v47 = vmul.f32 %v1932_v45, %v1926_v42  ;;  %v2107_v45 = vld [vmem:[%s3550_s18 + $0x28] sm:$0xff] (!%p2502_p5) }
 0xd3a   : > { %v1933_v48 = vmul.f32 %v1931_v46, %v1921_v44  ;;  %v2833_v46 = vpack.c.bf16 (!%p2502_p5), %v2194_v43, %v2193_v41 }
 0xd3b   : > { %v1936_v18 = vmul.f32 %v1934_v47, %v1926_v42 }
 0xd3c   : > { %v1935_v58 = vmul.f32 %v1933_v48, %v1921_v44  ;;  %v2108_v48 = vld [vmem:[%s3550_s18 + $0x30] sm:$0xff] (!%p2502_p5) }
 0xd3d   : > { %v1938_v49 = vadd.f32 %v1936_v18, %v1926_v42  ;;  %v2824_v42 = vpack.c.bf16 (!%p2502_p5), %v2105_v38, %v2104_v35  ;;  %v2109_v18 = vld [vmem:[%s3550_s18 + $0x38] sm:$0xff] (!%p2502_p5) }
 0xd3e   : > { %v1937_v50 = vadd.f32 %v1935_v58, %v1921_v44  ;;  %v2106_v44 = vld [vmem:[%s3550_s18 + $0x20] sm:$0xff] (!%p2502_p5)  ;;  %v2830_v58 = vpack.c.bf16 (!%p2502_p5), %v2109_v18, %v2108_v48 }
 0xd3f   : > { %v1940_v51 = vmul.f32 0.7978846, %v1938_v49  ;;  %2825 = vmatpush3.bf16.msra.mxu0 (!%p2502_p5), %v2824_v42  ;;  %v2827_v47 = vpack.c.bf16 (!%p2502_p5), %v2107_v45, %v2106_v44 }
 0xd40   : > { %v1939_v52 = vmul.f32 0.7978846, %v1937_v50  ;;  %2826 = vmatprep.subr.bf16.mxu0 (!%p2502_p5), %v2981_v36 }
 0xd41   : > { %2898 = vtanh.f32 %v1940_v51  ;;  %v2195_v51 = vld [vmem:[%s3551_s5 + $0x10] sm:$0xff] (!%p2502_p5) }
 0xd42   : > { %2900 = vtanh.f32 %v1939_v52  ;;  %v2196_v52 = vld [vmem:[%s3551_s5 + $0x18] sm:$0xff] (!%p2502_p5) }
 0xd43   : > { %2828 = vmatpush3.bf16.msra.mxu0 (!%p2502_p5), %v2827_v47 }
 0xd44   : > { %2829 = vmatprep.subr.bf16.mxu0 (!%p2502_p5), %v2981_v36 }
 0xd47   : > { %2831 = vmatpush3.bf16.msra.mxu0 (!%p2502_p5), %v2830_v58 }
 0xd4b   : > { %v2899_v53 = vpop.eup %2898 }
 0xd4c   : > { %v2901_v54 = vpop.eup %2900  ;;  %v1944_v55 = vadd.f32 1.0, %v2899_v53  ;;  %v2836_v53 = vpack.c.bf16 (!%p2502_p5), %v2196_v52, %v2195_v51 }
 0xd4d   : > { %v1943_v57 = vadd.f32 1.0, %v2901_v54  ;;  %v2197_v54 = vld [vmem:[%s3551_s5 + $0x20] sm:$0xff] (!%p2502_p5) }
 0xd4e   : > { %v1946_v62 = vmul.f32 %v1944_v55, %v1930_v59  ;;  %v2198_v55 = vld [vmem:[%s3551_s5 + $0x28] sm:$0xff] (!%p2502_p5)  ;;  %v2200_v59 = vld [vmem:[%s3551_s5 + $0x38] sm:$0xff] (!%p2502_p5) }
 0xd4f   : > { %v1945_v61 = vmul.f32 %v1943_v57, %v1929_v56  ;;  %v2839_v56 = vpack.c.bf16 (!%p2502_p5), %v2198_v55, %v2197_v54  ;;  %v2199_v57 = vld [vmem:[%s3551_s5 + $0x30] sm:$0xff] (!%p2502_p5) }
 0xd51   : > { %2699 = vmatprep.mubr.f32.mxu1 %v1945_v61  ;;  %v2842_v61 = vpack.c.bf16 (!%p2502_p5), %v2200_v59, %v2199_v57 }
 0xd52   : > { %2700 = vmatmul.mubr.f32.vlgmr.msra.gmra.mrb[12].mxu1 %v1946_v62  ;;  %v2503_v62 = vld [vmem:[%s3552_s17] ss:$0 sm:$0xff] (!%p2502_p5) }
 0xd53   : > { %2737 = vmatprep.mubr.msk.f32.mxu1 (!%p2502_p5), %vm2982_vm5, %v2983_v39  ;;  %2834 = vmatpush3.bf16.msra.mxu1 (!%p2502_p5), %v2833_v46 }
 0xd54   : > { %2835 = vmatprep.subr.bf16.mxu1 (!%p2502_p5), %v2981_v36 }
 0xd57   : > { %2837 = vmatpush3.bf16.msra.mxu1 (!%p2502_p5), %v2836_v53 }
 0xd58   : > { %2838 = vmatprep.subr.bf16.mxu1 (!%p2502_p5), %v2981_v36 }
 0xd5b   : > { %2840 = vmatpush3.bf16.msra.mxu1 (!%p2502_p5), %v2839_v56 }
 0xd5c   : > { %2841 = vmatprep.subr.bf16.mxu1 (!%p2502_p5), %v2981_v36 }
 0xd5f   : > { %2843 = vmatpush3.bf16.msra.mxu1 (!%p2502_p5), %v2842_v61 }
 0xe25   : > { %v2701_v63 = vpop.f32.mrb[12].mxu1 }
 0xe26   : > { %v2042_v0 = vadd.f32 %v2701_v63, %v2499_v60  ;;  %v2036_v1 = vpop.f32.mrb[13].mxu1 }
 0xe27   : > { %v2037_v2 = vadd.f32 %v2499_v60, %v2036_v1 }
 0xe28   : > { %v2046_v3 = vadd.f32 %v2042_v0, %v3341_v17 }
 0xe29   : > { %v2045_v4 = vadd.f32 %v2037_v2, %v3339_v16  ;;  %v2505_v2 = vld [vmem:[%s3553_s23] ss:$0 sm:$0xff] (!%p2502_p5) }
 0xe2a   : > { %v2052_v5 = vsel %vm931_vm1, %v2046_v3, 0.0 }
 0xe2b   : > { %2053 = vadd.xlane.f32.xlu1 %v2052_v5  ;;  %v2049_v6 = vsel %vm931_vm1, %v2045_v4, 0.0 }
 0xe2c   : > { %2050 = vadd.xlane.f32.xlu0 %v2049_v6 }
 0xeb8   : > { %v2054_v7 = vpop.xlane.xlu1 %2053 }
 0xeb9   : > { %v2056_v8 = vmul.f32 0.015625, %v2054_v7  ;;  %v2051_v9 = vpop.xlane.xlu0 %2050 }
 0xeba   : > { %v2055_v10 = vmul.f32 0.015625, %v2051_v9 }
 0xebb   : > { %v2058_v11 = vsub.f32 %v2046_v3, %v2056_v8 }
 0xebc   : > { %v2057_v12 = vsub.f32 %v2045_v4, %v2055_v10 }
 0xebd   : > { %v2060_v13 = vmul.f32 %v2058_v11, %v2058_v11 }
 0xebe   : > { %v2059_v14 = vmul.f32 %v2057_v12, %v2057_v12 }
 0xebf   : > { %v2064_v15 = vsel %vm931_vm1, %v2060_v13, 0.0 }
 0xec0   : > { %2065 = vadd.xlane.f32.xlu1 %v2064_v15  ;;  %v2061_v16 = vsel %vm931_vm1, %v2059_v14, 0.0 }
 0xec1   : > { %2062 = vadd.xlane.f32.xlu0 %v2061_v16 }
 0xf4d   : > { %v2066_v17 = vpop.xlane.xlu1 %2065 }
 0xf4e   : > { %v2068_v19 = vmul.f32 0.015625, %v2066_v17  ;;  %v2063_v20 = vpop.xlane.xlu0 %2062 }
 0xf4f   : > { %v2067_v21 = vmul.f32 0.015625, %v2063_v20 }
 0xf50   : > { %v2070_v22 = vadd.f32 1e-12, %v2068_v19 }
 0xf51   : > { %v2069_v40 = vadd.f32 1e-12, %v2067_v21 }
 0xf52   : > { %2902 = vrsqrt.f32 %v2070_v22 }
 0xf53   : > { %2904 = vrsqrt.f32 %v2069_v40 }
 0xf5c   : > { %v2903_v23 = vpop.eup %2902 }
 0xf5d   : > { %v2905_v25 = vpop.eup %2904  ;;  %v2074_v26 = vmul.f32 %v2903_v23, %v2058_v11 }
 0xf5e   : > { %v2073_v28 = vmul.f32 %v2905_v25, %v2057_v12  ;;  %2096 = sbr.rel (%p2502_p5) target bundleno = 4382 (0x111e), region = 112 }
 0xf5f   : > { %v2082_v29 = vmul.f32 %v2500_v24, %v2074_v26 }
 0xf60   : > { %v2081_v30 = vmul.f32 %v2500_v24, %v2073_v28 }
 0xf61   : > { %v2090_v31 = vadd.f32 %v2501_v27, %v2082_v29 }
 0xf62   : > { %v2089_v32 = vadd.f32 %v2501_v27, %v2081_v30 }
 0xf63   : > { %2092 = vst.msk [vmem:[#allocation2 + $0x8] sm:$0xff] %vm931_vm1, %v2090_v31  ;;  %v2098_v49 = vrot.slane (!%p2502_p5), %v2090_v31, 7 }
 0xf64   : > { %2091 = vst.msk [vmem:[#allocation2] sm:$0xff] %vm931_vm1, %v2089_v32 }
 0xf65   : > { %v2101_v50 = vsel %vm2100_vm6, %v2089_v32, %v2098_v49 }
 0xf66   : > { %2719 = vmatmul.mubr.msk.f32.vlgmr.msra.gmra.mrb[0].mxu0 %vm931_vm1, %v2101_v50 }
0x1039   : > { %v2186_v60 = vpop.f32.mrb[0].mxu0 }
0x103a   : > { %v2187_v63 = vadd.f32 %v2503_v62, %v2186_v60  ;;  %v2720_v0 = vpop.f32.mrb[1].mxu0 }
0x103c   : > { %2906 = vtanh.f32 %v2187_v63 }
0x1046   : > { %v2907_v1 = vpop.eup %2906 }
0x1047   : > { %2192 = vst.msk [vmem:[#allocation3] sm:$0x3] %vm2191_vm7, %v2907_v1  ;;  %2738 = vmatmul.mubr.msk.f32.vlgmr.msra.gmra.mrb[0].mxu1 %vm931_vm1, %v2907_v1 }
0x111a   : > { %v2277_v3 = vpop.f32.mrb[0].mxu1 }
0x111b   : > { %v2278_v4 = vadd.f32 %v2505_v2, %v2277_v3  ;;  %v2739_v5 = vpop.f32.mrb[1].mxu1 }
0x111d   : > { %2281 = vst [vmem:[#allocation5] sm:$0x3] %v2278_v4 }
0x111e PF: > { %p2852_p6 = scmp.eq.s32.totalorder %s3107_s28, 1  ;;  %s2984_s25 = smov [#allocation3]  }
0x111f   : > { %s2289_s1 = sshll.u32 %s2984_s25, 4  ;;  %s2985_s29 = smov [#allocation5]   ;;  %s2290_s1 = int_to_ptr.vmem [resolvable:$true] %s2289_s1 }
0x1120   : > { %s2300_s6 = sshll.u32 %s2985_s29, 4  ;;  %s2908_s4 = scalar_lea.vmem %s2290_s1, 32  ;;  %s2301_s6 = int_to_ptr.vmem [resolvable:$true] %s2300_s6 }
0x1121   : > { %p2909_p7 = scmp.ne.s32.totalorder %s2290_s1, %s2908_s4  ;;  %p2915_p10 = scmp.lt.s32.totalorder %s2290_s1, %s2290_s1 }
0x1122   : > { %p2916_p11 = scmp.lt.s32.totalorder %s2908_s4, %s2908_s4 }
0x1123   : > { %p2910_p8 = pnand %p2909_p7, %p2852_p6 }
0x1124   : > { %p2917_p12 = por %p2916_p11, %p2915_p10 }
0x1125   : > { %p2911_p9 = pneg %p2910_p8 }
0x1127   : > { %p2918_p13 = pnand %p2917_p12, %p2911_p9 }
0x1129   : > { %2921 = shalt.err (!%p2918_p13)
}
0x112a   : > { %s3554_s27 = sld [smem:[#allocation22_spill]] }
0x1130   : > { %s2922_s20 = scalar_lea.hbm %s3554_s27, 32 }
0x1131   : > { %p2923_p0 = scmp.ne.s32.totalorder %s3554_s27, %s2922_s20  ;;  %p2928_p3 = scmp.lt.u32.totalorder %s2922_s20, %s3554_s27 }
0x1133   : > { %p2924_p1 = pnand %p2923_p0, %p2852_p6 }
0x1135   : > { %p2925_p2 = pneg %p2924_p1 }
0x1137   : > { %p2930_p4 = pnand %p2928_p3, %p2925_p2 }
0x1139   : > { %2933 = shalt.err (!%p2930_p4)
}
0x113a   : > { %2845 = dma.vmem_to_hbm [thread:$0]  (%p2852_p6), %s2290_s1, 32, %s3554_s27, [#allocation4]  }
0x113b   : > { %s2934_s19 = scalar_lea.vmem %s2301_s6, 32  ;;  %p2941_p9 = scmp.lt.s32.totalorder %s2301_s6, %s2301_s6 }
0x113c   : > { %p2935_p5 = scmp.ne.s32.totalorder %s2301_s6, %s2934_s19  ;;  %p2942_p10 = scmp.lt.s32.totalorder %s2934_s19, %s2934_s19 }
0x113e   : > { %p2936_p7 = pnand %p2935_p5, %p2852_p6  ;;  %p2943_p11 = por %p2942_p10, %p2941_p9 }
0x1140   : > { %p2937_p8 = pneg %p2936_p7 }
0x1142   : > { %p2944_p12 = pnand %p2943_p11, %p2937_p8 }
0x1144   : > { %2947 = shalt.err (!%p2944_p12)
}
0x1145   : > { %s3555_s25 = sld [smem:[#allocation23_spill]] }
0x114b   : > { %s2948_s29 = scalar_lea.hbm %s3555_s25, 32 }
0x114c   : > { %p2949_p13 = scmp.ne.s32.totalorder %s3555_s25, %s2948_s29  ;;  %p2954_p2 = scmp.lt.u32.totalorder %s2948_s29, %s3555_s25 }
0x114e   : > { %p2950_p0 = pnand %p2949_p13, %p2852_p6 }
0x1150   : > { %p2951_p1 = pneg %p2950_p0 }
0x1152   : > { %p2956_p3 = pnand %p2954_p2, %p2951_p1 }
0x1154   : > { %2959 = shalt.err (!%p2956_p3)
}
0x1155   : > { %2847 = dma.vmem_to_hbm [thread:$0]  (%p2852_p6), %s2301_s6, 32, %s3555_s25, [#allocation6]  }
0x1156   : > { %2965 = dma.done.wait (%p2852_p6), [#allocation4], 32  }
0x1157   : > { %2967 = vsyncadd (%p2852_p6), [#allocation4], 4294967264 }
0x1158   : > { %2969 = dma.done.wait (%p2852_p6), [#allocation6], 32  }
0x1159   : > { %2971 = vsyncadd (%p2852_p6), [#allocation6], 4294967264 }
0x115a PF: > { %s3556_s7 = sld [smem:[#allocation9_spill]] }
0x1160   : > { %s35_s3 = sadd.s32 1, %s3556_s7  }
0x1161   : > { %p32_p4 = scmp.ge.s32.totalorder %s35_s3, 4  }
0x1163   :  { %34 = sbr.rel (!%p32_p4) target bundleno = 17 (0x11), region = 180 }
0x116a   :  { %2317 = vsyncpa [#allocation4], 1 }
0x116b   :  { %2319 = vsyncpa [#allocation4 + $0x1], 1 }
0x116c   :  { %2320 = vsyncpa [#allocation6], 1 }

</bundles_post_ra>
